<compile_context>
chip_gen: v7x
topology: tpu7x:2x2x1
jax: 0.10.0
libtpu: 0.0.40
codegen_flags: <defaults>
</compile_context>

<pallas_src>
import jax
import jax.numpy as jnp
from jax.experimental import pallas as pl
from jax.experimental.pallas import tpu as pltpu


def _round_up(x, m):
    return ((x + m - 1) // m) * m


# ----------------------------- Pallas kernel ------------------------------ #

def _optimizer_opti_kernel(
    x_ref, h1_ref, h2_ref,
    wrz1_ref, win1_ref, whn1_ref, brz1_ref, bin1_ref, bhn1_ref,
    wrz2_ref, win2_ref, whn2_ref, brz2_ref, bin2_ref, bhn2_ref,
    wo_ref, bo_ref,
    out_ref, hid1_ref, hid2_ref,
):
    H = hid1_ref.shape[1]
    cdt = wrz1_ref.dtype  # bf16 for MXU inputs; all VPU/EUP math stays f32

    def sigmoid(v):
        # sigmoid(v) = 0.5 * tanh(0.5 * v) + 0.5: one EUP op instead of exp+recip.
        return 0.5 * jnp.tanh(0.5 * v) + 0.5

    def gru_tanh(x_bf, h_f32, h_bf, w_rz, w_in, w_hn, b_rz, b_in, b_hn):
        # PyTorch nn.GRUCell semantics (gate order r, z, n), then the module's
        # outer tanh.  r/z gates use one fused K=(in+H) matmul over [x ; h].
        xh = jnp.concatenate([x_bf, h_bf], axis=1)
        rz = sigmoid(jnp.dot(xh, w_rz, preferred_element_type=jnp.float32) + b_rz)
        r = rz[:, :H]
        z = rz[:, H:]
        gi_n = jnp.dot(x_bf, w_in, preferred_element_type=jnp.float32) + b_in
        gh_n = jnp.dot(h_bf, w_hn, preferred_element_type=jnp.float32) + b_hn
        n = jnp.tanh(gi_n + r * gh_n)
        return jnp.tanh((1.0 - z) * n + z * h_f32)

    x_bf = x_ref[...]                       # bf16, lane-padded in the wrapper
    h1 = h1_ref[...]                        # f32 state
    h2 = h2_ref[...]

    nh1 = gru_tanh(x_bf, h1, h1.astype(cdt),
                   wrz1_ref[...], win1_ref[...], whn1_ref[...],
                   brz1_ref[...], bin1_ref[...], bhn1_ref[...])
    nh1_bf = nh1.astype(cdt)
    nh2 = gru_tanh(nh1_bf, h2, h2.astype(cdt),
                   wrz2_ref[...], win2_ref[...], whn2_ref[...],
                   brz2_ref[...], bin2_ref[...], bhn2_ref[...])

    # output0(cat(hid1, hid2)): in-register concat (lane-aligned at H=128) and a
    # single K=2H matmul into a lane-dense (padded-to-128) output slab.
    cat = jnp.concatenate([nh1_bf, nh2.astype(cdt)], axis=1)
    out = jnp.dot(cat, wo_ref[...], preferred_element_type=jnp.float32) + bo_ref[...]

    out_ref[...] = out.astype(out_ref.dtype)
    hid1_ref[...] = nh1.astype(hid1_ref.dtype)
    hid2_ref[...] = nh2.astype(hid2_ref.dtype)


# ------------------------------ JAX wrapper -------------------------------- #

def _choose_tiling(B):
    """Return (padded_B, tile_rows).

    Prefer >= 4 tiles (2 per v7x TensorCore, 2-4 pipelined steps on single-TC
    v5e/v6e), tile rows a multiple of 8, tiles capped at 256 rows.  Awkward B
    is padded up rather than falling back to one giant un-pipelined tile.
    """
    if B <= 16:
        return B, B
    Bp = _round_up(B, 8)
    for min_tiles in (4, 2):
        for tb in (256, 128, 64, 32, 16, 8):
            if Bp % tb == 0 and Bp // tb >= min_tiles:
                return Bp, tb
    return Bp, Bp


def prepare_params(params, weight_dtype=jnp.bfloat16):
    """One-time conversion from PyTorch layout to kernel layout (do at init).

    * weights pre-transposed to (in, out) and cast to bf16
    * r/z input+hidden weights stacked into one (in_pad + H, 2H) matrix and
      their biases pre-summed (b_in / b_hn stay separate, as the n gate needs)
    * layer-1 input rows and the output columns zero-padded to the 128-lane tile
    """
    H = params["w_hh1"].shape[1]
    inp_dim = params["w_ih1"].shape[1]
    in_pad = _round_up(inp_dim, 128)
    out_pad = _round_up(inp_dim, 128)

    def gru_pack(w_ih, w_hh, b_ih, b_hh, pad_rows):
        w_ih_t = w_ih.T.astype(jnp.float32)          # (in, 3H)
        w_hh_t = w_hh.T.astype(jnp.float32)          # (H, 3H)
        w_ih_rz = jnp.pad(w_ih_t[:, :2 * H], ((0, pad_rows), (0, 0)))
        w_in = jnp.pad(w_ih_t[:, 2 * H:], ((0, pad_rows), (0, 0)))
        return {
            "w_rz": jnp.concatenate([w_ih_rz, w_hh_t[:, :2 * H]], axis=0
                                    ).astype(weight_dtype),       # (in_pad+H, 2H)
            "w_in": w_in.astype(weight_dtype),                    # (in_pad, H)
            "w_hn": w_hh_t[:, 2 * H:].astype(weight_dtype),       # (H, H)
            "b_rz": (b_ih[:2 * H] + b_hh[:2 * H]).reshape(1, -1).astype(jnp.float32),
            "b_in": b_ih[2 * H:].reshape(1, -1).astype(jnp.float32),
            "b_hn": b_hh[2 * H:].reshape(1, -1).astype(jnp.float32),
        }

    w_out_t = params["w_out"].T.astype(jnp.float32)               # (2H, inp)
    return {
        "gru1": gru_pack(params["w_ih1"], params["w_hh1"],
                         params["b_ih1"], params["b_hh1"], in_pad - inp_dim),
        "gru2": gru_pack(params["w_ih2"], params["w_hh2"],
                         params["b_ih2"], params["b_hh2"], 0),
        "w_out": jnp.pad(w_out_t, ((0, 0), (0, out_pad - inp_dim))
                         ).astype(weight_dtype),                  # (2H, out_pad)
        "b_out": jnp.pad(params["b_out"].reshape(1, -1).astype(jnp.float32),
                         ((0, 0), (0, out_pad - inp_dim))),       # (1, out_pad)
    }


@jax.jit
def optimizer_opti_forward(inp0, hid_, kparams):
    """inp0: (B, inp_dim) f32; hid_: tuple of two (B, hid_dim) f32 arrays.

    kparams must come from prepare_params() (kernel layout, built once).
    """
    h1, h2 = hid_
    B, inp_dim = inp0.shape
    H = h1.shape[1]
    g1, g2 = kparams["gru1"], kparams["gru2"]
    in_pad = g1["w_in"].shape[0]
    out_pad = kparams["w_out"].shape[1]

    Bp, tb = _choose_tiling(B)
    grid = (Bp // tb,)

    # x is only consumed by the MXU: cast once to bf16 and lane-pad to 128 here
    # (the matching zero weight rows make the extra lanes inert).
    x_bf = jnp.pad(inp0.astype(jnp.bfloat16),
                   ((0, Bp - B), (0, in_pad - inp_dim)))
    if Bp != B:
        h1 = jnp.pad(h1, ((0, Bp - B), (0, 0)))
        h2 = jnp.pad(h2, ((0, Bp - B), (0, 0)))

    def row_spec(feat):
        # Batch-tiled activations / outputs.
        return pl.BlockSpec((tb, feat), lambda b: (b, 0))

    def const_spec(arr):
        # Same block every grid step -> weight/bias stays resident in VMEM.
        return pl.BlockSpec(arr.shape, lambda b: (0, 0))

    in_specs = [
        row_spec(in_pad), row_spec(H), row_spec(H),
        const_spec(g1["w_rz"]), const_spec(g1["w_in"]), const_spec(g1["w_hn"]),
        const_spec(g1["b_rz"]), const_spec(g1["b_in"]), const_spec(g1["b_hn"]),
        const_spec(g2["w_rz"]), const_spec(g2["w_in"]), const_spec(g2["w_hn"]),
        const_spec(g2["b_rz"]), const_spec(g2["b_in"]), const_spec(g2["b_hn"]),
        const_spec(kparams["w_out"]), const_spec(kparams["b_out"]),
    ]
    out_specs = (row_spec(out_pad), row_spec(H), row_spec(H))

    out_p, nh1, nh2 = pl.pallas_call(
        _optimizer_opti_kernel,
        out_shape=(
            jax.ShapeDtypeStruct((Bp, out_pad), inp0.dtype),
            jax.ShapeDtypeStruct((Bp, H), h1.dtype),
            jax.ShapeDtypeStruct((Bp, H), h2.dtype),
        ),
        grid=grid,
        in_specs=in_specs,
        out_specs=out_specs,
        # h1 -> hid1, h2 -> hid2: in-place state update when the caller donates.
        input_output_aliases={1: 1, 2: 2},
        compiler_params=pltpu.CompilerParams(
            dimension_semantics=("parallel",)),
    )(x_bf, h1, h2,
      g1["w_rz"], g1["w_in"], g1["w_hn"], g1["b_rz"], g1["b_in"], g1["b_hn"],
      g2["w_rz"], g2["w_in"], g2["w_hn"], g2["b_rz"], g2["b_in"], g2["b_hn"],
      kparams["w_out"], kparams["b_out"])

    out = out_p[:B, :inp_dim]
    if Bp != B:
        nh1 = nh1[:B]
        nh2 = nh2[:B]
    return out, (nh1, nh2)


# --------------------------- reference (pure JAX) --------------------------- #

def _gru_ref(x, h, w_ih, w_hh, b_ih, b_hh, H):
    gi = x @ w_ih.T + b_ih
    gh = h @ w_hh.T + b_hh
    i_r, i_z, i_n = gi[:, :H], gi[:, H:2 * H], gi[:, 2 * H:]
    h_r, h_z, h_n = gh[:, :H], gh[:, H:2 * H], gh[:, 2 * H:]
    r = jax.nn.sigmoid(i_r + h_r)
    z = jax.nn.sigmoid(i_z + h_z)
    n = jnp.tanh(i_n + r * h_n)
    return (1.0 - z) * n + z * h


def optimizer_opti_ref(inp0, hid_, params):
    h1, h2 = hid_
    H = h1.shape[1]
    hid1 = jnp.tanh(_gru_ref(inp0, h1, params["w_ih1"], params["w_hh1"],
                             params["b_ih1"], params["b_hh1"], H))
    hid2 = jnp.tanh(_gru_ref(hid1, h2, params["w_ih2"], params["w_hh2"],
                             params["b_ih2"], params["b_hh2"], H))
    hid = jnp.concatenate([hid1, hid2], axis=1)
    out = hid @ params["w_out"].T + params["b_out"]
    return out, (hid1, hid2)


# ------------------------------ param init --------------------------------- #

def init_params(key, inp_dim, hid_dim):
    ks = jax.random.split(key, 9)
    k = 1.0 / jnp.sqrt(hid_dim)  # PyTorch GRUCell default U(-1/sqrt(H), 1/sqrt(H))

    def u(key, shape):
        return jax.random.uniform(key, shape, jnp.float32, -k, k)

    ortho = jax.nn.initializers.orthogonal(scale=0.1)  # layer_init_with_orthogonal
    params = {
        "w_ih1": u(ks[0], (3 * hid_dim, inp_dim)),
        "w_hh1": u(ks[1], (3 * hid_dim, hid_dim)),
        "b_ih1": u(ks[2], (3 * hid_dim,)),
        "b_hh1": u(ks[3], (3 * hid_dim,)),
        "w_ih2": u(ks[4], (3 * hid_dim, hid_dim)),
        "w_hh2": u(ks[5], (3 * hid_dim, hid_dim)),
        "b_ih2": u(ks[6], (3 * hid_dim,)),
        "b_hh2": u(ks[7], (3 * hid_dim,)),
        "w_out": ortho(ks[8], (inp_dim, 2 * hid_dim)).astype(jnp.float32),
        "b_out": jnp.full((inp_dim,), 1e-6, jnp.float32),
    }
    return params


# ---------------------------------- main ------------------------------------ #

if __name__ == "__main__":
    # grid=(4,) at these shapes: 2 batch tiles per v7x TensorCore, 4 pipelined
    # steps on single-TC v5e/v6e.
    B, INP_DIM, HID_DIM = 128, 32, 128

    key = jax.random.PRNGKey(0)
    k_p, k_x, k_h1, k_h2 = jax.random.split(key, 4)

    params = init_params(k_p, INP_DIM, HID_DIM)   # PyTorch layout (reference)
    kparams = prepare_params(params)              # kernel layout, built ONCE

    inp0 = jax.random.normal(k_x, (B, INP_DIM), jnp.float32)
    h1 = jax.random.normal(k_h1, (B, HID_DIM), jnp.float32)
    h2 = jax.random.normal(k_h2, (B, HID_DIM), jnp.float32)

    out, (nh1, nh2) = optimizer_opti_forward(inp0, (h1, h2), kparams)
    jax.block_until_ready((out, nh1, nh2))

    out_ref, (nh1_ref, nh2_ref) = optimizer_opti_ref(inp0, (h1, h2), params)

    assert out.shape == (B, INP_DIM)
    assert nh1.shape == (B, HID_DIM) and nh2.shape == (B, HID_DIM)
    # Tolerances relaxed DELIBERATELY: the kernel feeds bf16 weights/activations
    # to the MXU (f32 accumulation), the reference is full f32.
    assert jnp.allclose(out, out_ref, atol=2e-2, rtol=2e-2)
    assert jnp.allclose(nh1, nh1_ref, atol=2e-2, rtol=2e-2)
    assert jnp.allclose(nh2, nh2_ref, atol=2e-2, rtol=2e-2)

    print("KERNEL_OK")
</pallas_src>

<mosaic_0001>
module attributes {stable_mosaic.version = 11 : i64} {
  func.func @_optimizer_opti_kernel(%arg0: i32, %arg1: memref<32x128xbf16, #tpu.memory_space<vmem>>, %arg2: memref<32x128xf32, #tpu.memory_space<vmem>>, %arg3: memref<32x128xf32, #tpu.memory_space<vmem>>, %arg4: memref<256x256xbf16, #tpu.memory_space<vmem>>, %arg5: memref<128x128xbf16, #tpu.memory_space<vmem>>, %arg6: memref<128x128xbf16, #tpu.memory_space<vmem>>, %arg7: memref<1x256xf32, #tpu.memory_space<vmem>>, %arg8: memref<1x128xf32, #tpu.memory_space<vmem>>, %arg9: memref<1x128xf32, #tpu.memory_space<vmem>>, %arg10: memref<256x256xbf16, #tpu.memory_space<vmem>>, %arg11: memref<128x128xbf16, #tpu.memory_space<vmem>>, %arg12: memref<128x128xbf16, #tpu.memory_space<vmem>>, %arg13: memref<1x256xf32, #tpu.memory_space<vmem>>, %arg14: memref<1x128xf32, #tpu.memory_space<vmem>>, %arg15: memref<1x128xf32, #tpu.memory_space<vmem>>, %arg16: memref<256x128xbf16, #tpu.memory_space<vmem>>, %arg17: memref<1x128xf32, #tpu.memory_space<vmem>>, %arg18: memref<32x128xf32, #tpu.memory_space<vmem>>, %arg19: memref<32x128xf32, #tpu.memory_space<vmem>>, %arg20: memref<32x128xf32, #tpu.memory_space<vmem>>) attributes {dimension_semantics = [#tpu.dimension_semantics<parallel>], iteration_bounds = array<i64: 4>, scalar_prefetch = 0 : i64, scratch_operands = 0 : i64, tpu.core_type = #tpu.core_type<tc>, window_params = [{transform_indices = @transform_0, window_bounds = array<i64: 32, 128>}, {transform_indices = @transform_1, window_bounds = array<i64: 32, 128>}, {transform_indices = @transform_2, window_bounds = array<i64: 32, 128>}, {pipeline_mode = #tpu.pipeline_mode<synchronous>, transform_indices = @transform_3, window_bounds = array<i64: 256, 256>}, {pipeline_mode = #tpu.pipeline_mode<synchronous>, transform_indices = @transform_4, window_bounds = array<i64: 128, 128>}, {pipeline_mode = #tpu.pipeline_mode<synchronous>, transform_indices = @transform_5, window_bounds = array<i64: 128, 128>}, {pipeline_mode = #tpu.pipeline_mode<synchronous>, transform_indices = @transform_6, window_bounds = array<i64: 1, 256>}, {pipeline_mode = #tpu.pipeline_mode<synchronous>, transform_indices = @transform_7, window_bounds = array<i64: 1, 128>}, {pipeline_mode = #tpu.pipeline_mode<synchronous>, transform_indices = @transform_8, window_bounds = array<i64: 1, 128>}, {pipeline_mode = #tpu.pipeline_mode<synchronous>, transform_indices = @transform_9, window_bounds = array<i64: 256, 256>}, {pipeline_mode = #tpu.pipeline_mode<synchronous>, transform_indices = @transform_10, window_bounds = array<i64: 128, 128>}, {pipeline_mode = #tpu.pipeline_mode<synchronous>, transform_indices = @transform_11, window_bounds = array<i64: 128, 128>}, {pipeline_mode = #tpu.pipeline_mode<synchronous>, transform_indices = @transform_12, window_bounds = array<i64: 1, 256>}, {pipeline_mode = #tpu.pipeline_mode<synchronous>, transform_indices = @transform_13, window_bounds = array<i64: 1, 128>}, {pipeline_mode = #tpu.pipeline_mode<synchronous>, transform_indices = @transform_14, window_bounds = array<i64: 1, 128>}, {pipeline_mode = #tpu.pipeline_mode<synchronous>, transform_indices = @transform_15, window_bounds = array<i64: 256, 128>}, {pipeline_mode = #tpu.pipeline_mode<synchronous>, transform_indices = @transform_16, window_bounds = array<i64: 1, 128>}, {transform_indices = @transform_17, window_bounds = array<i64: 32, 128>}, {transform_indices = @transform_18, window_bounds = array<i64: 32, 128>}, {transform_indices = @transform_19, window_bounds = array<i64: 32, 128>}]} {
    %c0 = arith.constant 0 : index
    %c0_0 = arith.constant 0 : index
    %0 = vector.load %arg1[%c0, %c0_0] : memref<32x128xbf16, #tpu.memory_space<vmem>>, vector<32x128xbf16>
    %c0_1 = arith.constant 0 : index
    %c0_2 = arith.constant 0 : index
    %1 = vector.load %arg2[%c0_1, %c0_2] : memref<32x128xf32, #tpu.memory_space<vmem>>, vector<32x128xf32>
    %c0_3 = arith.constant 0 : index
    %c0_4 = arith.constant 0 : index
    %2 = vector.load %arg3[%c0_3, %c0_4] : memref<32x128xf32, #tpu.memory_space<vmem>>, vector<32x128xf32>
    %3 = arith.truncf %1 : vector<32x128xf32> to vector<32x128xbf16>
    %c0_5 = arith.constant 0 : index
    %c0_6 = arith.constant 0 : index
    %4 = vector.load %arg4[%c0_5, %c0_6] : memref<256x256xbf16, #tpu.memory_space<vmem>>, vector<256x256xbf16>
    %c0_7 = arith.constant 0 : index
    %c0_8 = arith.constant 0 : index
    %5 = vector.load %arg5[%c0_7, %c0_8] : memref<128x128xbf16, #tpu.memory_space<vmem>>, vector<128x128xbf16>
    %c0_9 = arith.constant 0 : index
    %c0_10 = arith.constant 0 : index
    %6 = vector.load %arg6[%c0_9, %c0_10] : memref<128x128xbf16, #tpu.memory_space<vmem>>, vector<128x128xbf16>
    %c0_11 = arith.constant 0 : index
    %c0_12 = arith.constant 0 : index
    %7 = vector.load %arg7[%c0_11, %c0_12] : memref<1x256xf32, #tpu.memory_space<vmem>>, vector<1x256xf32>
    %c0_13 = arith.constant 0 : index
    %c0_14 = arith.constant 0 : index
    %8 = vector.load %arg8[%c0_13, %c0_14] : memref<1x128xf32, #tpu.memory_space<vmem>>, vector<1x128xf32>
    %c0_15 = arith.constant 0 : index
    %c0_16 = arith.constant 0 : index
    %9 = vector.load %arg9[%c0_15, %c0_16] : memref<1x128xf32, #tpu.memory_space<vmem>>, vector<1x128xf32>
    %10 = tpu.concatenate %0, %3 in 1 : vector<32x128xbf16>, vector<32x128xbf16> -> vector<32x256xbf16>
    %cst = arith.constant dense<0.000000e+00> : vector<32x256xf32>
    %11 = tpu.matmul %10, %4, %cst {dimension_numbers = #tpu.dot_dimension_numbers<[1], [0], [0], [1], [0, 0, 1, 1], [], []>} : vector<32x256xbf16>, vector<256x256xbf16>, vector<32x256xf32> -> vector<32x256xf32>
    %12 = vector.broadcast %7 : vector<1x256xf32> to vector<32x256xf32>
    %13 = arith.addf %11, %12 : vector<32x256xf32>
    %cst_17 = arith.constant 5.000000e-01 : f32
    %14 = vector.broadcast %cst_17 : f32 to vector<32x256xf32>
    %15 = arith.mulf %14, %13 : vector<32x256xf32>
    %16 = math.tanh %15 : vector<32x256xf32>
    %cst_18 = arith.constant 5.000000e-01 : f32
    %17 = vector.broadcast %cst_18 : f32 to vector<32x256xf32>
    %18 = arith.mulf %17, %16 : vector<32x256xf32>
    %cst_19 = arith.constant 5.000000e-01 : f32
    %19 = vector.broadcast %cst_19 : f32 to vector<32x256xf32>
    %20 = arith.addf %18, %19 : vector<32x256xf32>
    %21 = vector.extract_strided_slice %20 {offsets = [0, 0], sizes = [32, 128], strides = [1, 1]} : vector<32x256xf32> to vector<32x128xf32>
    %22 = vector.extract_strided_slice %20 {offsets = [0, 128], sizes = [32, 128], strides = [1, 1]} : vector<32x256xf32> to vector<32x128xf32>
    %cst_20 = arith.constant dense<0.000000e+00> : vector<32x128xf32>
    %23 = tpu.matmul %0, %5, %cst_20 {dimension_numbers = #tpu.dot_dimension_numbers<[1], [0], [0], [1], [0, 0, 1, 1], [], []>} : vector<32x128xbf16>, vector<128x128xbf16>, vector<32x128xf32> -> vector<32x128xf32>
    %24 = vector.broadcast %8 : vector<1x128xf32> to vector<32x128xf32>
    %25 = arith.addf %23, %24 : vector<32x128xf32>
    %cst_21 = arith.constant dense<0.000000e+00> : vector<32x128xf32>
    %26 = tpu.matmul %3, %6, %cst_21 {dimension_numbers = #tpu.dot_dimension_numbers<[1], [0], [0], [1], [0, 0, 1, 1], [], []>} : vector<32x128xbf16>, vector<128x128xbf16>, vector<32x128xf32> -> vector<32x128xf32>
    %27 = vector.broadcast %9 : vector<1x128xf32> to vector<32x128xf32>
    %28 = arith.addf %26, %27 : vector<32x128xf32>
    %29 = arith.mulf %21, %28 : vector<32x128xf32>
    %30 = arith.addf %25, %29 : vector<32x128xf32>
    %31 = math.tanh %30 : vector<32x128xf32>
    %cst_22 = arith.constant 1.000000e+00 : f32
    %32 = vector.broadcast %cst_22 : f32 to vector<32x128xf32>
    %33 = arith.subf %32, %22 : vector<32x128xf32>
    %34 = arith.mulf %33, %31 : vector<32x128xf32>
    %35 = arith.mulf %22, %1 : vector<32x128xf32>
    %36 = arith.addf %34, %35 : vector<32x128xf32>
    %37 = math.tanh %36 : vector<32x128xf32>
    %38 = arith.truncf %37 : vector<32x128xf32> to vector<32x128xbf16>
    %39 = arith.truncf %2 : vector<32x128xf32> to vector<32x128xbf16>
    %c0_23 = arith.constant 0 : index
    %c0_24 = arith.constant 0 : index
    %40 = vector.load %arg10[%c0_23, %c0_24] : memref<256x256xbf16, #tpu.memory_space<vmem>>, vector<256x256xbf16>
    %c0_25 = arith.constant 0 : index
    %c0_26 = arith.constant 0 : index
    %41 = vector.load %arg11[%c0_25, %c0_26] : memref<128x128xbf16, #tpu.memory_space<vmem>>, vector<128x128xbf16>
    %c0_27 = arith.constant 0 : index
    %c0_28 = arith.constant 0 : index
    %42 = vector.load %arg12[%c0_27, %c0_28] : memref<128x128xbf16, #tpu.memory_space<vmem>>, vector<128x128xbf16>
    %c0_29 = arith.constant 0 : index
    %c0_30 = arith.constant 0 : index
    %43 = vector.load %arg13[%c0_29, %c0_30] : memref<1x256xf32, #tpu.memory_space<vmem>>, vector<1x256xf32>
    %c0_31 = arith.constant 0 : index
    %c0_32 = arith.constant 0 : index
    %44 = vector.load %arg14[%c0_31, %c0_32] : memref<1x128xf32, #tpu.memory_space<vmem>>, vector<1x128xf32>
    %c0_33 = arith.constant 0 : index
    %c0_34 = arith.constant 0 : index
    %45 = vector.load %arg15[%c0_33, %c0_34] : memref<1x128xf32, #tpu.memory_space<vmem>>, vector<1x128xf32>
    %46 = tpu.concatenate %38, %39 in 1 : vector<32x128xbf16>, vector<32x128xbf16> -> vector<32x256xbf16>
    %cst_35 = arith.constant dense<0.000000e+00> : vector<32x256xf32>
    %47 = tpu.matmul %46, %40, %cst_35 {dimension_numbers = #tpu.dot_dimension_numbers<[1], [0], [0], [1], [0, 0, 1, 1], [], []>} : vector<32x256xbf16>, vector<256x256xbf16>, vector<32x256xf32> -> vector<32x256xf32>
    %48 = vector.broadcast %43 : vector<1x256xf32> to vector<32x256xf32>
    %49 = arith.addf %47, %48 : vector<32x256xf32>
    %cst_36 = arith.constant 5.000000e-01 : f32
    %50 = vector.broadcast %cst_36 : f32 to vector<32x256xf32>
    %51 = arith.mulf %50, %49 : vector<32x256xf32>
    %52 = math.tanh %51 : vector<32x256xf32>
    %cst_37 = arith.constant 5.000000e-01 : f32
    %53 = vector.broadcast %cst_37 : f32 to vector<32x256xf32>
    %54 = arith.mulf %53, %52 : vector<32x256xf32>
    %cst_38 = arith.constant 5.000000e-01 : f32
    %55 = vector.broadcast %cst_38 : f32 to vector<32x256xf32>
    %56 = arith.addf %54, %55 : vector<32x256xf32>
    %57 = vector.extract_strided_slice %56 {offsets = [0, 0], sizes = [32, 128], strides = [1, 1]} : vector<32x256xf32> to vector<32x128xf32>
    %58 = vector.extract_strided_slice %56 {offsets = [0, 128], sizes = [32, 128], strides = [1, 1]} : vector<32x256xf32> to vector<32x128xf32>
    %cst_39 = arith.constant dense<0.000000e+00> : vector<32x128xf32>
    %59 = tpu.matmul %38, %41, %cst_39 {dimension_numbers = #tpu.dot_dimension_numbers<[1], [0], [0], [1], [0, 0, 1, 1], [], []>} : vector<32x128xbf16>, vector<128x128xbf16>, vector<32x128xf32> -> vector<32x128xf32>
    %60 = vector.broadcast %44 : vector<1x128xf32> to vector<32x128xf32>
    %61 = arith.addf %59, %60 : vector<32x128xf32>
    %cst_40 = arith.constant dense<0.000000e+00> : vector<32x128xf32>
    %62 = tpu.matmul %39, %42, %cst_40 {dimension_numbers = #tpu.dot_dimension_numbers<[1], [0], [0], [1], [0, 0, 1, 1], [], []>} : vector<32x128xbf16>, vector<128x128xbf16>, vector<32x128xf32> -> vector<32x128xf32>
    %63 = vector.broadcast %45 : vector<1x128xf32> to vector<32x128xf32>
    %64 = arith.addf %62, %63 : vector<32x128xf32>
    %65 = arith.mulf %57, %64 : vector<32x128xf32>
    %66 = arith.addf %61, %65 : vector<32x128xf32>
    %67 = math.tanh %66 : vector<32x128xf32>
    %cst_41 = arith.constant 1.000000e+00 : f32
    %68 = vector.broadcast %cst_41 : f32 to vector<32x128xf32>
    %69 = arith.subf %68, %58 : vector<32x128xf32>
    %70 = arith.mulf %69, %67 : vector<32x128xf32>
    %71 = arith.mulf %58, %2 : vector<32x128xf32>
    %72 = arith.addf %70, %71 : vector<32x128xf32>
    %73 = math.tanh %72 : vector<32x128xf32>
    %74 = arith.truncf %73 : vector<32x128xf32> to vector<32x128xbf16>
    %75 = tpu.concatenate %38, %74 in 1 : vector<32x128xbf16>, vector<32x128xbf16> -> vector<32x256xbf16>
    %c0_42 = arith.constant 0 : index
    %c0_43 = arith.constant 0 : index
    %76 = vector.load %arg16[%c0_42, %c0_43] : memref<256x128xbf16, #tpu.memory_space<vmem>>, vector<256x128xbf16>
    %cst_44 = arith.constant dense<0.000000e+00> : vector<32x128xf32>
    %77 = tpu.matmul %75, %76, %cst_44 {dimension_numbers = #tpu.dot_dimension_numbers<[1], [0], [0], [1], [0, 0, 1, 1], [], []>} : vector<32x256xbf16>, vector<256x128xbf16>, vector<32x128xf32> -> vector<32x128xf32>
    %c0_45 = arith.constant 0 : index
    %c0_46 = arith.constant 0 : index
    %78 = vector.load %arg17[%c0_45, %c0_46] : memref<1x128xf32, #tpu.memory_space<vmem>>, vector<1x128xf32>
    %79 = vector.broadcast %78 : vector<1x128xf32> to vector<32x128xf32>
    %80 = arith.addf %77, %79 : vector<32x128xf32>
    %c0_47 = arith.constant 0 : index
    %c0_48 = arith.constant 0 : index
    %81 = vector.load %arg18[%c0_47, %c0_48] : memref<32x128xf32, #tpu.memory_space<vmem>>, vector<32x128xf32>
    tpu.vector_store %arg18[%c0_47, %c0_48], %80 {strides = array<i32>} : memref<32x128xf32, #tpu.memory_space<vmem>>, vector<32x128xf32>,
    %c0_49 = arith.constant 0 : index
    %c0_50 = arith.constant 0 : index
    %82 = vector.load %arg19[%c0_49, %c0_50] : memref<32x128xf32, #tpu.memory_space<vmem>>, vector<32x128xf32>
    tpu.vector_store %arg19[%c0_49, %c0_50], %37 {strides = array<i32>} : memref<32x128xf32, #tpu.memory_space<vmem>>, vector<32x128xf32>,
    %c0_51 = arith.constant 0 : index
    %c0_52 = arith.constant 0 : index
    %83 = vector.load %arg20[%c0_51, %c0_52] : memref<32x128xf32, #tpu.memory_space<vmem>>, vector<32x128xf32>
    tpu.vector_store %arg20[%c0_51, %c0_52], %73 {strides = array<i32>} : memref<32x128xf32, #tpu.memory_space<vmem>>, vector<32x128xf32>,
    return
  }
  func.func @transform_0(%arg0: i32) -> (i32, i32) {
    %c0_i32 = arith.constant 0 : i32
    %c0_i32_0 = arith.constant 0 : i32
    return %arg0, %c0_i32 : i32, i32
  }
  func.func @transform_1(%arg0: i32) -> (i32, i32) {
    %c0_i32 = arith.constant 0 : i32
    %c0_i32_0 = arith.constant 0 : i32
    return %arg0, %c0_i32 : i32, i32
  }
  func.func @transform_2(%arg0: i32) -> (i32, i32) {
    %c0_i32 = arith.constant 0 : i32
    %c0_i32_0 = arith.constant 0 : i32
    return %arg0, %c0_i32 : i32, i32
  }
  func.func @transform_3(%arg0: i32) -> (i32, i32) {
    %c0_i32 = arith.constant 0 : i32
    %c0_i32_0 = arith.constant 0 : i32
    %c0_i32_1 = arith.constant 0 : i32
    return %c0_i32, %c0_i32_0 : i32, i32
  }
  func.func @transform_4(%arg0: i32) -> (i32, i32) {
    %c0_i32 = arith.constant 0 : i32
    %c0_i32_0 = arith.constant 0 : i32
    %c0_i32_1 = arith.constant 0 : i32
    return %c0_i32, %c0_i32_0 : i32, i32
  }
  func.func @transform_5(%arg0: i32) -> (i32, i32) {
    %c0_i32 = arith.constant 0 : i32
    %c0_i32_0 = arith.constant 0 : i32
    %c0_i32_1 = arith.constant 0 : i32
    return %c0_i32, %c0_i32_0 : i32, i32
  }
  func.func @transform_6(%arg0: i32) -> (i32, i32) {
    %c0_i32 = arith.constant 0 : i32
    %c0_i32_0 = arith.constant 0 : i32
    %c0_i32_1 = arith.constant 0 : i32
    return %c0_i32, %c0_i32_0 : i32, i32
  }
  func.func @transform_7(%arg0: i32) -> (i32, i32) {
    %c0_i32 = arith.constant 0 : i32
    %c0_i32_0 = arith.constant 0 : i32
    %c0_i32_1 = arith.constant 0 : i32
    return %c0_i32, %c0_i32_0 : i32, i32
  }
  func.func @transform_8(%arg0: i32) -> (i32, i32) {
    %c0_i32 = arith.constant 0 : i32
    %c0_i32_0 = arith.constant 0 : i32
    %c0_i32_1 = arith.constant 0 : i32
    return %c0_i32, %c0_i32_0 : i32, i32
  }
  func.func @transform_9(%arg0: i32) -> (i32, i32) {
    %c0_i32 = arith.constant 0 : i32
    %c0_i32_0 = arith.constant 0 : i32
    %c0_i32_1 = arith.constant 0 : i32
    return %c0_i32, %c0_i32_0 : i32, i32
  }
  func.func @transform_10(%arg0: i32) -> (i32, i32) {
    %c0_i32 = arith.constant 0 : i32
    %c0_i32_0 = arith.constant 0 : i32
    %c0_i32_1 = arith.constant 0 : i32
    return %c0_i32, %c0_i32_0 : i32, i32
  }
  func.func @transform_11(%arg0: i32) -> (i32, i32) {
    %c0_i32 = arith.constant 0 : i32
    %c0_i32_0 = arith.constant 0 : i32
    %c0_i32_1 = arith.constant 0 : i32
    return %c0_i32, %c0_i32_0 : i32, i32
  }
  func.func @transform_12(%arg0: i32) -> (i32, i32) {
    %c0_i32 = arith.constant 0 : i32
    %c0_i32_0 = arith.constant 0 : i32
    %c0_i32_1 = arith.constant 0 : i32
    return %c0_i32, %c0_i32_0 : i32, i32
  }
  func.func @transform_13(%arg0: i32) -> (i32, i32) {
    %c0_i32 = arith.constant 0 : i32
    %c0_i32_0 = arith.constant 0 : i32
    %c0_i32_1 = arith.constant 0 : i32
    return %c0_i32, %c0_i32_0 : i32, i32
  }
  func.func @transform_14(%arg0: i32) -> (i32, i32) {
    %c0_i32 = arith.constant 0 : i32
    %c0_i32_0 = arith.constant 0 : i32
    %c0_i32_1 = arith.constant 0 : i32
    return %c0_i32, %c0_i32_0 : i32, i32
  }
  func.func @transform_15(%arg0: i32) -> (i32, i32) {
    %c0_i32 = arith.constant 0 : i32
    %c0_i32_0 = arith.constant 0 : i32
    %c0_i32_1 = arith.constant 0 : i32
    return %c0_i32, %c0_i32_0 : i32, i32
  }
  func.func @transform_16(%arg0: i32) -> (i32, i32) {
    %c0_i32 = arith.constant 0 : i32
    %c0_i32_0 = arith.constant 0 : i32
    %c0_i32_1 = arith.constant 0 : i32
    return %c0_i32, %c0_i32_0 : i32, i32
  }
  func.func @transform_17(%arg0: i32) -> (i32, i32) {
    %c0_i32 = arith.constant 0 : i32
    %c0_i32_0 = arith.constant 0 : i32
    return %arg0, %c0_i32 : i32, i32
  }
  func.func @transform_18(%arg0: i32) -> (i32, i32) {
    %c0_i32 = arith.constant 0 : i32
    %c0_i32_0 = arith.constant 0 : i32
    return %arg0, %c0_i32 : i32, i32
  }
  func.func @transform_19(%arg0: i32) -> (i32, i32) {
    %c0_i32 = arith.constant 0 : i32
    %c0_i32_0 = arith.constant 0 : i32
    return %arg0, %c0_i32 : i32, i32
  }
}

</mosaic_0001>

<bundles_post_ra>
// kernel: optimizer_opti_forward.1
= control target key start
LH: loop header
LB: loop body
LE: loop exit
PB: predicated region body
PF: predicated region fallthrough
CT: control target
= control target key end

     0   :  { %s3820_s0 = inlined_call_operand.vmem [shape: bf16[128,128], index: 0, kind: input, shape index: {}]   ;;  %s3821_s1 = inlined_call_operand.vmem [shape: f32[128,128], index: 1, kind: input, shape index: {}, may-alias: {1,18}]   ;;  %s3822_s2 = inlined_call_operand.vmem [shape: f32[128,128], index: 2, kind: input, shape index: {}, may-alias: {2,19}]   ;;  %s3823_s3 = inlined_call_operand.vmem [shape: bf16[256,256], index: 3, kind: input, shape index: {}]   ;;  %s3824_s4 = inlined_call_operand.hbm [shape: bf16[128,128], index: 4, kind: input, shape index: {}]   ;;  %s3825_s5 = inlined_call_operand.hbm [shape: bf16[128,128], index: 5, kind: input, shape index: {}]   ;;  %s3826_s6 = inlined_call_operand.vmem [shape: f32[1,256], index: 6, kind: input, shape index: {}]   ;;  %s3827_s7 = inlined_call_operand.vmem [shape: f32[1,128], index: 7, kind: input, shape index: {}]   ;;  %s3828_s8 = inlined_call_operand.vmem [shape: f32[1,128], index: 8, kind: input, shape index: {}]   ;;  %s3829_s9 = inlined_call_operand.vmem [shape: bf16[256,256], index: 9, kind: input, shape index: {}]   ;;  %s3830_s10 = inlined_call_operand.hbm [shape: bf16[128,128], index: 10, kind: input, shape index: {}]   ;;  %s3831_s11 = inlined_call_operand.hbm [shape: bf16[128,128], index: 11, kind: input, shape index: {}]   ;;  %s3832_s12 = inlined_call_operand.vmem [shape: f32[1,256], index: 12, kind: input, shape index: {}]   ;;  %s3833_s13 = inlined_call_operand.hbm [shape: f32[1,128], index: 13, kind: input, shape index: {}]   ;;  %s3834_s14 = inlined_call_operand.hbm [shape: f32[1,128], index: 14, kind: input, shape index: {}]   ;;  %s3835_s15 = inlined_call_operand.hbm [shape: bf16[256,128], index: 15, kind: input, shape index: {}]   ;;  %s3836_s16 = inlined_call_operand.vmem [shape: f32[1,128], index: 16, kind: input, shape index: {}]   ;;  %s3837_s17 = inlined_call_operand.vmem [shape: f32[128,128], index: 17, kind: output, shape index: {0}]   ;;  %s3838_s18 = inlined_call_operand.vmem [shape: f32[128,128], index: 18, kind: output, shape index: {1}, may-alias: {1,18}]   ;;  %s3839_s19 = inlined_call_operand.vmem [shape: f32[128,128], index: 19, kind: output, shape index: {2}, may-alias: {2,19}]  }
   0x1   :  { %3845 = sst [smem:[#allocation17_spill]] %s3820_s0 }
   0x2   :  { %3846 = sst [smem:[#allocation18_spill]] %s3821_s1 }
   0x3   :  { %3847 = sst [smem:[#allocation19_spill]] %s3822_s2 }
   0x4   :  { %3848 = sst [smem:[#allocation20_spill]] %s3823_s3 }
   0x5   :  { %3849 = sst [smem:[#allocation21_spill]] %s3832_s12 }
   0x6   :  { %3850 = sst [smem:[#allocation22_spill]] %s3836_s16 }
   0x7   :  { %3851 = sst [smem:[#allocation23_spill]] %s3837_s17 }
   0x8   :  { %3852 = sst [smem:[#allocation24_spill]] %s3838_s18 }
   0x9   :  { %3853 = sst [smem:[#allocation25_spill]] %s3839_s19 }
   0xa   :  { %25 = vsyncpa [#allocation3], 0 }
   0xb   :  { %26 = vsyncpa [#allocation5], 0 }
   0xc   :  { %27 = vsyncpa [#allocation8], 0 }
   0xd   :  { %28 = vsyncpa [#allocation11], 0  ;;  %s3279_s0 = smov 0  }
   0xe LB: > { %s3841_s30 = sadd.s32 4294967295, %s3168_s0   ;;  %p2345_p0 = scmp.ge.s32.totalorder %s3168_s0, 1  ;;  %s3168_s0 = sphi %s3279_s0, %s34_s0  }
   0xf   : > { %p489_p1 = scmp.lt.s32.totalorder %s3168_s0, 5  ;;  %p3289_p2 = scmp.eq.s32.totalorder %s3841_s30, 0 }
  0x10   : > { %s3170_s1 = smov [#allocation4]   ;;  %s3171_s2 = smov [#allocation7]  }
  0x11   : > { %s3854_s20 = scalar_select %p3289_p2, 1, 0 }
  0x12   : > { %p3293_p3 = pnand %p2345_p0, %p489_p1  ;;  %s517_s22 = sshll.u32 %s3170_s1, 4  ;;  %s3297_s22 = int_to_ptr.vmem [resolvable:$true] %s517_s22 }
  0x13   : > { %s555_s23 = sshll.u32 %s3171_s2, 4  ;;  %s3172_s25 = smov [#allocation10]   ;;  %s3301_s23 = int_to_ptr.vmem [resolvable:$true] %s555_s23 }
  0x14   : > { %s3855_s21 = scalar_select %p3293_p3, 1, 0 }
  0x15   : > { %p2687_p4 = pneg %p3293_p3  ;;  %s583_s3 = sshll.u32 %s3172_s25, 4  ;;  %s3309_s3 = int_to_ptr.vmem [resolvable:$true] %s583_s3 }
  0x16   : > { %s3173_s26 = smov [#allocation2]   ;;  %s2950_s1 = scalar_lea.hbm %s3825_s5, 1024 }
  0x17   : > { %p3305_p5 = pnand %p3289_p2, %p2687_p4  ;;  %s3311_s27 = sshll.u32 %s3173_s26, 4  ;;  %s505_s27 = int_to_ptr.vmem [resolvable:$true] %s3311_s27 }
  0x18   : > { %p2951_p6 = scmp.ne.s32.totalorder %s3825_s5, %s2950_s1  ;;  %p2957_p10 = scmp.lt.u32.totalorder %s2950_s1, %s3825_s5 }
  0x19   : > { %p3321_p7 = pneg %p3305_p5 }
  0x1b   : > { %p2953_p8 = pnand %p3321_p7, %p2951_p6 }
  0x1d   : > { %p2954_p9 = pneg %p2953_p8 }
  0x1f   : > { %p2959_p11 = pnand %p2957_p10, %p2954_p9 }
  0x21   : > { %2962 = shalt.err (!%p2959_p11)
}
  0x22   : > { %s2963_s30 = scalar_lea.vmem %s3297_s22, 1024  ;;  %p2971_p1 = scmp.lt.s32.totalorder %s3297_s22, %s3297_s22 }
  0x23   : > { %p2964_p12 = scmp.ne.s32.totalorder %s3297_s22, %s2963_s30  ;;  %p2972_p4 = scmp.lt.s32.totalorder %s2963_s30, %s2963_s30 }
  0x25   : > { %p2966_p13 = pnand %p2964_p12, %p3321_p7  ;;  %p2973_p6 = por %p2972_p4, %p2971_p1 }
  0x27   : > { %p2967_p0 = pneg %p2966_p13 }
  0x29   : > { %p2974_p8 = pnand %p2973_p6, %p2967_p0 }
  0x2b   : > { %2977 = shalt.err (!%p2974_p8)
}
  0x2c   : > { %s3174_s28 = smov 64   ;;  %s3175_s29 = smov 4  }
  0x2d   : > { %2693 = dma.hbm_to_vmem [thread:$0]  (!%p3305_p5), %s3825_s5, 1024, %s3297_s22, [#allocation5], %s3174_s28, %s3174_s28, %s3175_s29  }
  0x2e   : > { %s2978_s30 = scalar_lea.hbm %s3831_s11, 1024 }
  0x2f   : > { %p2979_p9 = scmp.ne.s32.totalorder %s3831_s11, %s2978_s30  ;;  %p2985_p12 = scmp.lt.u32.totalorder %s2978_s30, %s3831_s11 }
  0x31   : > { %p2981_p10 = pnand %p2979_p9, %p3321_p7 }
  0x33   : > { %p2982_p11 = pneg %p2981_p10 }
  0x35   : > { %p2987_p13 = pnand %p2985_p12, %p2982_p11 }
  0x37   : > { %2990 = shalt.err (!%p2987_p13)
}
  0x38   : > { %s2991_s22 = scalar_lea.vmem %s3301_s23, 1024  ;;  %p2999_p6 = scmp.lt.s32.totalorder %s3301_s23, %s3301_s23 }
  0x39   : > { %p2992_p0 = scmp.ne.s32.totalorder %s3301_s23, %s2991_s22  ;;  %p3000_p8 = scmp.lt.s32.totalorder %s2991_s22, %s2991_s22 }
  0x3b   : > { %p2994_p1 = pnand %p2992_p0, %p3321_p7  ;;  %p3001_p9 = por %p3000_p8, %p2999_p6 }
  0x3d   : > { %p2995_p4 = pneg %p2994_p1 }
  0x3f   : > { %p3002_p10 = pnand %p3001_p9, %p2995_p4 }
  0x41   : > { %3005 = shalt.err (!%p3002_p10)
}
  0x42   : > { %2699 = dma.hbm_to_vmem [thread:$0]  (!%p3305_p5), %s3831_s11, 1024, %s3301_s23, [#allocation8], %s3174_s28, %s3174_s28, %s3175_s29  }
  0x43   : > { %s3006_s1 = scalar_lea.hbm %s3834_s14, 16 }
  0x44   : > { %p3007_p11 = scmp.ne.s32.totalorder %s3834_s14, %s3006_s1  ;;  %p3013_p0 = scmp.lt.u32.totalorder %s3006_s1, %s3834_s14 }
  0x46   : > { %p3009_p12 = pnand %p3007_p11, %p3321_p7 }
  0x48   : > { %p3010_p13 = pneg %p3009_p12 }
  0x4a   : > { %p3015_p1 = pnand %p3013_p0, %p3010_p13 }
  0x4c   : > { %3018 = shalt.err (!%p3015_p1)
}
  0x4d   : > { %s3019_s23 = scalar_lea.vmem %s3309_s3, 16  ;;  %s3026_s22 = scalar_lea.vmem %s3309_s3, 32 }
  0x4e   : > { %p3020_p4 = scmp.ne.s32.totalorder %s3309_s3, %s3019_s23  ;;  %p3027_p9 = scmp.lt.s32.totalorder %s3309_s3, %s3309_s3 }
  0x4f   : > { %p3028_p10 = scmp.lt.s32.totalorder %s3026_s22, %s3019_s23 }
  0x50   : > { %p3022_p6 = pnand %p3020_p4, %p3321_p7 }
  0x51   : > { %p3029_p11 = por %p3028_p10, %p3027_p9 }
  0x52   : > { %p3023_p8 = pneg %p3022_p6 }
  0x54   : > { %p3030_p12 = pnand %p3029_p11, %p3023_p8 }
  0x56   : > { %3033 = shalt.err (!%p3030_p12)
}
  0x57   : > { %2705 = dma.hbm_to_vmem [thread:$0]  (!%p3305_p5), %s3834_s14, 16, %s3309_s3, [#allocation11]  }
  0x58   : > { %s3034_s1 = scalar_lea.hbm %s3824_s4, 1024 }
  0x59   : > { %p3035_p13 = scmp.ne.s32.totalorder %s3824_s4, %s3034_s1  ;;  %p3041_p4 = scmp.lt.u32.totalorder %s3034_s1, %s3824_s4 }
  0x5b   : > { %p3037_p0 = pnand %p3035_p13, %p3321_p7 }
  0x5d   : > { %p3038_p1 = pneg %p3037_p0 }
  0x5f   : > { %p3043_p6 = pnand %p3041_p4, %p3038_p1 }
  0x61   : > { %3046 = shalt.err (!%p3043_p6)
}
  0x62   : > { %s3047_s23 = scalar_lea.vmem %s505_s27, 1024  ;;  %p3055_p11 = scmp.lt.s32.totalorder %s505_s27, %s505_s27 }
  0x63   : > { %p3048_p8 = scmp.ne.s32.totalorder %s505_s27, %s3047_s23  ;;  %p3056_p12 = scmp.lt.s32.totalorder %s3047_s23, %s3047_s23 }
  0x65   : > { %p3050_p9 = pnand %p3048_p8, %p3321_p7  ;;  %p3057_p2 = por %p3056_p12, %p3055_p11 }
  0x67   : > { %p3051_p10 = pneg %p3050_p9 }
  0x69   : > { %p3058_p3 = pnand %p3057_p2, %p3051_p10 }
  0x6b   : > { %3061 = shalt.err (!%p3058_p3)
}
  0x6c   : > { %2690 = dma.hbm_to_vmem [thread:$0]  (!%p3305_p5), %s3824_s4, 1024, %s505_s27, [#allocation3], %s3174_s28, %s3174_s28, %s3175_s29  }
  0x6d   : > { %s3176_s12 = smov [#allocation6]   ;;  %s3177_s18 = smov [#allocation9]  }
  0x6e   : > { %s542_s16 = sshll.u32 %s3176_s12, 4  ;;  %s572_s19 = sshll.u32 %s3177_s18, 4  ;;  %s543_s16 = int_to_ptr.vmem [resolvable:$true] %s542_s16  ;;  %s573_s19 = int_to_ptr.vmem [resolvable:$true] %s572_s19 }
  0x6f   : > { %s3062_s25 = scalar_lea.hbm %s3830_s10, 1024 }
  0x70   : > { %p3063_p2 = scmp.ne.s32.totalorder %s3830_s10, %s3062_s25  ;;  %p3069_p0 = scmp.lt.u32.totalorder %s3062_s25, %s3830_s10 }
  0x72   : > { %p3065_p3 = pnand %p3063_p2, %p3321_p7 }
  0x74   : > { %p3066_p13 = pneg %p3065_p3 }
  0x76   : > { %p3071_p1 = pnand %p3069_p0, %p3066_p13 }
  0x78   : > { %3074 = shalt.err (!%p3071_p1)
}
  0x79   : > { %s3075_s27 = scalar_lea.vmem %s543_s16, 1024  ;;  %p3083_p9 = scmp.lt.s32.totalorder %s543_s16, %s543_s16 }
  0x7a   : > { %p3076_p4 = scmp.ne.s32.totalorder %s543_s16, %s3075_s27  ;;  %p3084_p10 = scmp.lt.s32.totalorder %s3075_s27, %s3075_s27 }
  0x7c   : > { %p3078_p6 = pnand %p3076_p4, %p3321_p7  ;;  %p3085_p11 = por %p3084_p10, %p3083_p9 }
  0x7e   : > { %p3079_p8 = pneg %p3078_p6 }
  0x80   : > { %p3086_p12 = pnand %p3085_p11, %p3079_p8 }
  0x82   : > { %3089 = shalt.err (!%p3086_p12)
}
  0x83   : > { %2696 = dma.hbm_to_vmem [thread:$0]  (!%p3305_p5), %s3830_s10, 1024, %s543_s16, [#allocation5], %s3174_s28, %s3174_s28, %s3175_s29  }
  0x84   : > { %s3090_s2 = scalar_lea.hbm %s3833_s13, 16 }
  0x85   : > { %p3091_p2 = scmp.ne.s32.totalorder %s3833_s13, %s3090_s2  ;;  %p3097_p0 = scmp.lt.u32.totalorder %s3090_s2, %s3833_s13 }
  0x87   : > { %p3093_p3 = pnand %p3091_p2, %p3321_p7 }
  0x89   : > { %p3094_p13 = pneg %p3093_p3 }
  0x8b   : > { %p3099_p1 = pnand %p3097_p0, %p3094_p13 }
  0x8d   : > { %3102 = shalt.err (!%p3099_p1)
}
  0x8e   : > { %s3103_s3 = scalar_lea.vmem %s573_s19, 16  ;;  %s3110_s16 = scalar_lea.vmem %s573_s19, 32 }
  0x8f   : > { %p3104_p4 = scmp.ne.s32.totalorder %s573_s19, %s3103_s3  ;;  %p3111_p9 = scmp.lt.s32.totalorder %s573_s19, %s573_s19 }
  0x90   : > { %p3112_p10 = scmp.lt.s32.totalorder %s3110_s16, %s3103_s3 }
  0x91   : > { %p3106_p6 = pnand %p3104_p4, %p3321_p7 }
  0x92   : > { %p3113_p11 = por %p3112_p10, %p3111_p9 }
  0x93   : > { %p3107_p8 = pneg %p3106_p6 }
  0x95   : > { %p3114_p12 = pnand %p3113_p11, %p3107_p8 }
  0x97   : > { %3117 = shalt.err (!%p3114_p12)
}
  0x98   : > { %2702 = dma.hbm_to_vmem [thread:$0]  (!%p3305_p5), %s3833_s13, 16, %s573_s19, [#allocation8]  }
  0x99   : > { %s3178_s12 = smov [#allocation12]   ;;  %s3118_s25 = scalar_lea.hbm %s3835_s15, 2048 }
  0x9a   : > { %s593_s18 = sshll.u32 %s3178_s12, 4  ;;  %p3119_p2 = scmp.ne.s32.totalorder %s3835_s15, %s3118_s25  ;;  %s594_s18 = int_to_ptr.vmem [resolvable:$true] %s593_s18 }
  0x9b   : > { %p3125_p0 = scmp.lt.u32.totalorder %s3118_s25, %s3835_s15 }
  0x9c   : > { %p3121_p3 = pnand %p3119_p2, %p3321_p7 }
  0x9e   : > { %p3122_p13 = pneg %p3121_p3 }
  0xa0   : > { %p3127_p1 = pnand %p3125_p0, %p3122_p13 }
  0xa2   : > { %3130 = shalt.err (!%p3127_p1)
}
  0xa3   : > { %s3131_s19 = scalar_lea.vmem %s594_s18, 2048  ;;  %p3139_p9 = scmp.lt.s32.totalorder %s594_s18, %s594_s18 }
  0xa4   : > { %p3132_p4 = scmp.ne.s32.totalorder %s594_s18, %s3131_s19  ;;  %p3140_p10 = scmp.lt.s32.totalorder %s3131_s19, %s3131_s19 }
  0xa6   : > { %p3134_p6 = pnand %p3132_p4, %p3321_p7  ;;  %p3141_p11 = por %p3140_p10, %p3139_p9 }
  0xa8   : > { %p3135_p8 = pneg %p3134_p6 }
  0xaa   : > { %p3142_p12 = pnand %p3141_p11, %p3135_p8 }
  0xac   : > { %3145 = shalt.err (!%p3142_p12)
}
  0xad   : > { %2708 = dma.hbm_to_vmem [thread:$0]  (!%p3305_p5), %s3835_s15, 2048, %s594_s18, [#allocation11], %s3174_s28, %s3174_s28, %s3175_s29  }
  0xae   : > { %p3858_p2 = scmp.ne.s32.totalorder %s3855_s21, 0 }
  0xaf   : > { %p3859_p7 = scmp.ne.s32.totalorder (!%p3858_p2), %s3854_s20, 0 }
  0xb0   : > { %639 = sbr.rel (%p3858_p2) target bundleno = 1036 (0x40c), region = 88 }
  0xb7   : > { %3151 = dma.done.wait (%p3859_p7), [#allocation3], 1024  }
  0xb8   : > { %3153 = vsyncadd (%p3859_p7), [#allocation3], 4294966272 }
  0xb9   : > { %3155 = dma.done.wait (%p3859_p7), [#allocation5], 2048  }
  0xba   : > { %3157 = vsyncadd (%p3859_p7), [#allocation5], 4294965248 }
  0xbb   : > { %3159 = dma.done.wait (%p3859_p7), [#allocation8], 1040  }
  0xbc   : > { %3161 = vsyncadd (%p3859_p7), [#allocation8], 4294966256 }
  0xbd   : > { %3163 = dma.done.wait (%p3859_p7), [#allocation11], 2064  }
  0xbe   : > { %3165 = vsyncadd (%p3859_p7), [#allocation11], 4294965232  ;;  %s3860_s24 = sld [smem:[#allocation20_spill]]  ;;  %v2754_v6 = vld [vmem:[#allocation2] sm:$0xff]   ;;  %s3861_s3 = sadd.s32 4294967295, %s3168_s0   ;;  %v2758_v8 = vld [vmem:[#allocation2 + $0x8] sm:$0xff]  }
  0xbf   : > { %s2362_s19 = sshll.u32 %s3861_s3, 2  ;;  %2563 = vmatprep.subr.bf16.mxu1 %v2754_v6  ;;  %v2762_v10 = vld [vmem:[#allocation2 + $0x10] sm:$0xff]   ;;  %v2766_v13 = vld [vmem:[#allocation2 + $0x18] sm:$0xff]   ;;  %v2770_v16 = vld [vmem:[#allocation2 + $0x20] sm:$0xff]   ;;  %s3862_s23 = sld [smem:[#allocation17_spill]] }
  0xc0   : > { %2564 = vmatpush3.bf16.msra.mxu1 %v2754_v6  ;;  %p740_p5 = scmp.lt.s32.totalorder %s2362_s19, 15  ;;  %v2774_v19 = vld [vmem:[#allocation2 + $0x28] sm:$0xff]   ;;  %v2778_v23 = vld [vmem:[#allocation2 + $0x30] sm:$0xff]   ;;  %v2782_v26 = vld [vmem:[#allocation2 + $0x38] sm:$0xff]   ;;  %s3864_s1 = sld [smem:[#allocation19_spill]] }
  0xc1   : > { %2565 = vmatprep.subr.bf16.mxu1 %v2758_v8  ;;  %v2787_v29 = vld [vmem:[#allocation4] sm:$0xff]   ;;  %v2792_v36 = vld [vmem:[#allocation4 + $0x8] sm:$0xff]   ;;  %v2796_v39 = vld [vmem:[#allocation4 + $0x10] sm:$0xff]   ;;  %s3865_s27 = sld [smem:[#allocation24_spill]]  ;;  %s3866_s29 = sld [smem:[#allocation21_spill]] }
  0xc2   : > { %s3871_s19 = smov (!%p740_p5, %s2362_s19), 15  ;;  %v2800_v42 = vld [vmem:[#allocation4 + $0x18] sm:$0xff]   ;;  %v2802_v45 = vld [vmem:[#allocation4 + $0x20] sm:$0xff]   ;;  %v2803_v48 = vld [vmem:[#allocation4 + $0x28] sm:$0xff]   ;;  %s3868_s2 = sld [smem:[#allocation22_spill]] }
  0xc3   : > { %s2363_s20 = sshll.u32 %s3871_s19, 2  ;;  %s3557_s18 = sshll.u32 %s3871_s19, 3  ;;  %v2804_v51 = vld [vmem:[#allocation4 + $0x30] sm:$0xff]   ;;  %v2805_v54 = vld [vmem:[#allocation4 + $0x38] sm:$0xff]   ;;  %v2806_v56 = vld [vmem:[%s3829_s9] ss:$8 sps:$4 sm:$0xff]  }
  0xc4   : > { %v2740_v0 = vld [vmem:[%s3860_s24 + $0x4] ss:$8 sps:$4 sm:$0xff]   ;;  %v2742_v1 = vld [vmem:[%s3860_s24] ss:$8 sps:$4 sm:$0xff]   ;;  %v2743_v2 = vld [vmem:[%s3860_s24 + $0x14] ss:$8 sps:$4 sm:$0xff]   ;;  %2566 = vmatpush3.bf16.msra.mxu1 %v2758_v8 }
  0xc5   : > { %1040 = vmatprep.subr.bf16.mxu0 %v2740_v0  ;;  %v2745_v3 = vld [vmem:[%s3860_s24 + $0x10] ss:$8 sps:$4 sm:$0xff]   ;;  %v2746_v4 = vld [vmem:[%s3860_s24 + $0x24] ss:$8 sps:$4 sm:$0xff]   ;;  %v2748_v5 = vld [vmem:[%s3860_s24 + $0x20] ss:$8 sps:$4 sm:$0xff]   ;;  %2567 = vmatprep.subr.bf16.mxu1 %v2762_v10  ;;  %s3539_s3 = scalar_lea.vmem %s3862_s23, %s2363_s20 }
  0xc6   : > { %1041 = vmatpush1.bf16.msra.mxu0 %v2742_v1  ;;  %v2749_v7 = vld [vmem:[%s3860_s24 + $0x34] ss:$8 sps:$4 sm:$0xff]   ;;  %v2751_v9 = vld [vmem:[%s3860_s24 + $0x30] ss:$8 sps:$4 sm:$0xff]   ;;  %v2752_v11 = vld [vmem:[%s3860_s24 + $0x44] ss:$8 sps:$4 sm:$0xff]   ;;  %s3728_s20 = scalar_lea.vmem %s3864_s1, %s3557_s18 }
  0xc7   : > { %1042 = vmatprep.subr.bf16.mxu0 %v2743_v2  ;;  %v2755_v12 = vld [vmem:[%s3860_s24 + $0x40] ss:$8 sps:$4 sm:$0xff]   ;;  %v2756_v14 = vld [vmem:[%s3860_s24 + $0x54] ss:$8 sps:$4 sm:$0xff]   ;;  %v2759_v15 = vld [vmem:[%s3860_s24 + $0x50] ss:$8 sps:$4 sm:$0xff]   ;;  %s767_s17 = scalar_lea.vmem %s3865_s27, %s3557_s18 }
  0xc8   : > { %2568 = vmatpush3.bf16.msra.mxu1 %v2762_v10  ;;  %v2760_v17 = vld [vmem:[%s3860_s24 + $0x64] ss:$8 sps:$4 sm:$0xff]   ;;  %v2763_v18 = vld [vmem:[%s3860_s24 + $0x60] ss:$8 sps:$4 sm:$0xff]   ;;  %v2764_v20 = vld [vmem:[%s3860_s24 + $0x74] ss:$8 sps:$4 sm:$0xff]  }
  0xc9   : > { %2569 = vmatprep.subr.bf16.mxu1 %v2766_v13  ;;  %v3548_v21 = vld [vmem:[%s3539_s3] sm:$0xff]   ;;  %v2767_v22 = vld [vmem:[%s3860_s24 + $0x70] ss:$8 sps:$4 sm:$0xff]   ;;  %v2772_v27 = vld [vmem:[%s3860_s24 + $0x94] ss:$8 sps:$4 sm:$0xff]   ;;  %s3863_s23 = sld [smem:[#allocation18_spill]] }
  0xca   : > { %1043 = vmatpush1.bf16.msra.mxu0 %v2745_v3  ;;  %v2768_v24 = vld [vmem:[%s3860_s24 + $0x84] ss:$8 sps:$4 sm:$0xff]   ;;  %2579 = vmatprep.mubr.bf16.mxu1 %v3548_v21  ;;  %v2771_v25 = vld [vmem:[%s3860_s24 + $0x80] ss:$8 sps:$4 sm:$0xff]   ;;  %v2775_v28 = vld [vmem:[%s3860_s24 + $0x90] ss:$8 sps:$4 sm:$0xff]  }
  0xcb   : > { %1044 = vmatprep.subr.bf16.mxu0 %v2746_v4  ;;  %v2776_v32 = vld [vmem:[%s3860_s24 + $0xa4] ss:$8 sps:$4 sm:$0xff]   ;;  %v2779_v35 = vld [vmem:[%s3860_s24 + $0xa0] ss:$8 sps:$4 sm:$0xff]   ;;  %v2780_v37 = vld [vmem:[%s3860_s24 + $0xb4] ss:$8 sps:$4 sm:$0xff]  }
  0xcc   : > { %2570 = vmatpush3.bf16.msra.mxu1 %v2766_v13  ;;  %v2789_v34 = vld [vmem:[%s3539_s3 + $0x8] sm:$0xff]   ;;  %v2783_v38 = vld [vmem:[%s3860_s24 + $0xb0] ss:$8 sps:$4 sm:$0xff]   ;;  %v2790_v43 = vld [vmem:[%s3860_s24 + $0xd4] ss:$8 sps:$4 sm:$0xff]   ;;  %s3867_s1 = sld [smem:[#allocation25_spill]] }
  0xcd   : > { %2571 = vmatprep.subr.bf16.mxu1 %v2770_v16  ;;  %v2784_v40 = vld [vmem:[%s3860_s24 + $0xc4] ss:$8 sps:$4 sm:$0xff]   ;;  %v2788_v41 = vld [vmem:[%s3860_s24 + $0xc0] ss:$8 sps:$4 sm:$0xff]   ;;  %v2793_v44 = vld [vmem:[%s3860_s24 + $0xd0] ss:$8 sps:$4 sm:$0xff]  }
  0xce   : > { %1045 = vmatpush1.bf16.msra.mxu0 %v2748_v5  ;;  %v2794_v46 = vld [vmem:[%s3860_s24 + $0xe4] ss:$8 sps:$4 sm:$0xff]   ;;  %v2797_v47 = vld [vmem:[%s3860_s24 + $0xe0] ss:$8 sps:$4 sm:$0xff]   ;;  %v2798_v49 = vld [vmem:[%s3860_s24 + $0xf4] ss:$8 sps:$4 sm:$0xff]  }
  0xcf   : > { %1046 = vmatprep.subr.bf16.mxu0 %v2749_v7  ;;  %s3569_s19 = scalar_lea.vmem %s3863_s23, %s3557_s18  ;;  %v2801_v50 = vld [vmem:[%s3860_s24 + $0xf0] ss:$8 sps:$4 sm:$0xff]   ;;  %v2808_v57 = vld [vmem:[%s3829_s9 + $0x4] ss:$8 sps:$4 sm:$0xff]   ;;  %v2811_v58 = vld [vmem:[%s3829_s9 + $0x14] ss:$8 sps:$4 sm:$0xff]  }
  0xd0   : > { %2572 = vmatpush3.bf16.msra.mxu1 %v2770_v16  ;;  %v3575_v30 = vld [vmem:[%s3569_s19] sm:$0xff]  ;;  %v3578_v31 = vld [vmem:[%s3569_s19 + $0x8] sm:$0xff]  ;;  %v3620_v52 = vld [vmem:[%s3569_s19 + $0x10] sm:$0xff]  ;;  %s3869_s30 = sld [smem:[#allocation23_spill]] }
  0xd1   : > { %2573 = vmatprep.subr.bf16.mxu1 %v2774_v19  ;;  %v788_v33 = vpack.c.bf16 %v3578_v31, %v3575_v30  ;;  %v3623_v53 = vld [vmem:[%s3569_s19 + $0x18] sm:$0xff]  ;;  %v2814_v60 = vld [vmem:[%s3829_s9 + $0x24] ss:$8 sps:$4 sm:$0xff]   ;;  %v2812_v61 = vld [vmem:[%s3829_s9 + $0x20] ss:$8 sps:$4 sm:$0xff]  }
  0xd2   : > { %1047 = vmatpush1.bf16.msra.mxu0 %v2751_v9  ;;  %v789_v55 = vpack.c.bf16 %v3623_v53, %v3620_v52  ;;  %v2809_v59 = vld [vmem:[%s3829_s9 + $0x10] ss:$8 sps:$4 sm:$0xff]   ;;  %v2817_v62 = vld [vmem:[%s3829_s9 + $0x34] ss:$8 sps:$4 sm:$0xff]   ;;  %v2820_v0 = vld [vmem:[%s3829_s9 + $0x44] ss:$8 sps:$4 sm:$0xff]  }
  0xd3   : > { %1048 = vmatprep.subr.bf16.mxu0 %v2752_v11  ;;  %1072 = vmatprep.mubr.bf16.mxu0 %v788_v33  ;;  %v2815_v63 = vld [vmem:[%s3829_s9 + $0x30] ss:$8 sps:$4 sm:$0xff]   ;;  %v2818_v1 = vld [vmem:[%s3829_s9 + $0x40] ss:$8 sps:$4 sm:$0xff]   ;;  %v2823_v2 = vld [vmem:[%s3829_s9 + $0x54] ss:$8 sps:$4 sm:$0xff]  }
  0xd4   : > { %2574 = vmatpush3.bf16.msra.mxu1 %v2774_v19  ;;  %v2821_v3 = vld [vmem:[%s3829_s9 + $0x50] ss:$8 sps:$4 sm:$0xff]   ;;  %v2826_v4 = vld [vmem:[%s3829_s9 + $0x64] ss:$8 sps:$4 sm:$0xff]   ;;  %v2824_v5 = vld [vmem:[%s3829_s9 + $0x60] ss:$8 sps:$4 sm:$0xff]  }
  0xd5   : > { %2575 = vmatprep.subr.bf16.mxu1 %v2778_v23  ;;  %v2829_v6 = vld [vmem:[%s3829_s9 + $0x74] ss:$8 sps:$4 sm:$0xff]   ;;  %v2827_v7 = vld [vmem:[%s3829_s9 + $0x70] ss:$8 sps:$4 sm:$0xff]   ;;  %v2832_v8 = vld [vmem:[%s3829_s9 + $0x84] ss:$8 sps:$4 sm:$0xff]  }
  0xd6   : > { %1049 = vmatpush1.bf16.msra.mxu0 %v2755_v12  ;;  %v2830_v9 = vld [vmem:[%s3829_s9 + $0x80] ss:$8 sps:$4 sm:$0xff]   ;;  %v2835_v10 = vld [vmem:[%s3829_s9 + $0x94] ss:$8 sps:$4 sm:$0xff]   ;;  %v2833_v11 = vld [vmem:[%s3829_s9 + $0x90] ss:$8 sps:$4 sm:$0xff]   ;;  %s761_s23 = scalar_lea.vmem %s3869_s30, %s3557_s18 }
  0xd7   : > { %1050 = vmatprep.subr.bf16.mxu0 %v2756_v14  ;;  %v2836_v12 = vld [vmem:[#allocation6] sm:$0xff]   ;;  %v2843_v16 = vld [vmem:[%s3829_s9 + $0xb4] ss:$8 sps:$4 sm:$0xff]  }
  0xd8   : > { %2576 = vmatpush3.bf16.msra.mxu1 %v2778_v23  ;;  %v2839_v13 = vld [vmem:[%s3829_s9 + $0xa4] ss:$8 sps:$4 sm:$0xff]   ;;  %v2837_v14 = vld [vmem:[%s3829_s9 + $0xa0] ss:$8 sps:$4 sm:$0xff]   ;;  %v2849_v23 = vld [vmem:[%s3829_s9 + $0xd0] ss:$8 sps:$4 sm:$0xff]  }
  0xd9   : > { %2577 = vmatprep.subr.bf16.mxu1 %v2782_v26  ;;  %v2847_v19 = vld [vmem:[%s3829_s9 + $0xc4] ss:$8 sps:$4 sm:$0xff]  }
  0xda   : > { %1051 = vmatpush1.bf16.msra.mxu0 %v2759_v15  ;;  %v2840_v15 = vld [vmem:[#allocation6 + $0x8] sm:$0xff]  }
  0xdb   : > { %1052 = vmatprep.subr.bf16.mxu0 %v2760_v17  ;;  %v2841_v17 = vld [vmem:[%s3829_s9 + $0xb0] ss:$8 sps:$4 sm:$0xff]  }
  0xdc   : > { %2578 = vmatpush3.bf16.msra.mxu1 %v2782_v26  ;;  %v2853_v26 = vld [vmem:[%s3829_s9 + $0xe0] ss:$8 sps:$4 sm:$0xff]  }
  0xdd   : > { %2583 = vmatprep.subr.bf16.mxu1 %v2787_v29 }
  0xde   : > { %1053 = vmatpush1.bf16.msra.mxu0 %v2763_v18  ;;  %v2844_v18 = vld [vmem:[#allocation6 + $0x10] sm:$0xff]  }
  0xdf   : > { %1054 = vmatprep.subr.bf16.mxu0 %v2764_v20  ;;  %2580 = vmatmul.mubr.bf16.vlgmr.msra.gmra.mrb[0].mxu1 %v2789_v34  ;;  %v2845_v20 = vld [vmem:[%s3829_s9 + $0xc0] ss:$8 sps:$4 sm:$0xff]  }
  0xe0   : > { %2584 = vmatpush3.bf16.msra.mxu1 %v2787_v29  ;;  %2599 = vmatprep.mubr.bf16.mxu1 %v788_v33  ;;  %v2857_v29 = vld [vmem:[%s3829_s9 + $0xf0] ss:$8 sps:$4 sm:$0xff]   ;;  %v3734_v33 = vld [vmem:[%s3728_s20 + $0x8] sm:$0xff] }
  0xe1   : > { %2585 = vmatprep.subr.bf16.mxu1 %v2792_v36 }
  0xe2   : > { %1055 = vmatpush1.bf16.msra.mxu0 %v2767_v22  ;;  %v2851_v22 = vld [vmem:[%s3829_s9 + $0xd4] ss:$8 sps:$4 sm:$0xff]  }
  0xe3   : > { %1056 = vmatprep.subr.bf16.mxu0 %v2768_v24  ;;  %v2852_v24 = vld [vmem:[#allocation6 + $0x20] sm:$0xff]  }
  0xe4   : > { %2586 = vmatpush3.bf16.msra.mxu1 %v2792_v36  ;;  %v2861_v36 = vld [vmem:[#allocation6 + $0x38] sm:$0xff]  }
  0xe5   : > { %2587 = vmatprep.subr.bf16.mxu1 %v2796_v39 }
  0xe6   : > { %1057 = vmatpush1.bf16.msra.mxu0 %v2771_v25  ;;  %v2855_v25 = vld [vmem:[%s3829_s9 + $0xe4] ss:$8 sps:$4 sm:$0xff]  }
  0xe7   : > { %1058 = vmatprep.subr.bf16.mxu0 %v2772_v27  ;;  %v2856_v27 = vld [vmem:[#allocation6 + $0x28] sm:$0xff]  }
  0xe8   : > { %2588 = vmatpush3.bf16.msra.mxu1 %v2796_v39 }
  0xe9   : > { %2589 = vmatprep.subr.bf16.mxu1 %v2800_v42 }
  0xea   : > { %1059 = vmatpush1.bf16.msra.mxu0 %v2775_v28  ;;  %v2859_v28 = vld [vmem:[%s3829_s9 + $0xf4] ss:$8 sps:$4 sm:$0xff]  }
  0xeb   : > { %1060 = vmatprep.subr.bf16.mxu0 %v2776_v32  ;;  %v3731_v32 = vld [vmem:[%s3728_s20] sm:$0xff] }
  0xec   : > { %2590 = vmatpush3.bf16.msra.mxu1 %v2800_v42  ;;  %v870_v42 = vlaneseq }
  0xed   : > { %2591 = vmatprep.subr.bf16.mxu1 %v2802_v45 }
  0xee   : > { %1061 = vmatpush1.bf16.msra.mxu0 %v2779_v35  ;;  %v2860_v35 = vld [vmem:[#allocation6 + $0x30] sm:$0xff]  }
  0xef   : > { %1062 = vmatprep.subr.bf16.mxu0 %v2780_v37  ;;  %v3741_v37 = vld [vmem:[#allocation7] sm:$0xff]  }
  0xf0   : > { %2592 = vmatpush3.bf16.msra.mxu1 %v2802_v45  ;;  %v854_v45 = vld [vmem:[%s3826_s6] sm:$0x3] }
  0xf1   : > { %2593 = vmatprep.subr.bf16.mxu1 %v2803_v48 }
  0xf2   : > { %1063 = vmatpush1.bf16.msra.mxu0 %v2783_v38 }
  0xf3   : > { %1064 = vmatprep.subr.bf16.mxu0 %v2784_v40 }
  0xf4   : > { %2594 = vmatpush3.bf16.msra.mxu1 %v2803_v48 }
  0xf5   : > { %2595 = vmatprep.subr.bf16.mxu1 %v2804_v51 }
  0xf6   : > { %1065 = vmatpush1.bf16.msra.mxu0 %v2788_v41 }
  0xf7   : > { %1066 = vmatprep.subr.bf16.mxu0 %v2790_v43  ;;  %v3748_v43 = vshrl.u32 %v870_v42, 7 }
  0xf8   : > { %2596 = vmatpush3.bf16.msra.mxu1 %v2804_v51 }
  0xf9   : > { %2597 = vmatprep.subr.bf16.mxu1 %v2805_v54 }
  0xfa   : > { %1067 = vmatpush1.bf16.msra.mxu0 %v2793_v44  ;;  %v872_v44 = vsub.s32 0, %v3748_v43 }
  0xfb   : > { %1068 = vmatprep.subr.bf16.mxu0 %v2794_v46  ;;  %v876_v46 = vsub.s32 1, %v3748_v43 }
  0xfc   : > { %2598 = vmatpush3.bf16.msra.mxu1 %v2805_v54 }
  0xfd   : > { %2603 = vmatprep.subr.bf16.mxu1 %v2836_v12 }
  0xfe   : > { %1069 = vmatpush1.bf16.msra.mxu0 %v2797_v47  ;;  %v873_v47 = vrot.slane %v854_v45, %v872_v44 }
  0xff   : > { %1070 = vmatprep.subr.bf16.mxu0 %v2798_v49  ;;  %2600 = vmatmul.mubr.bf16.vlgmr.msra.gmra.mrb[4].mxu1 %v789_v55  ;;  %v877_v49 = vrot.slane %v854_v45, %v876_v46 }
 0x100   : > { %2604 = vmatpush3.bf16.msra.mxu1 %v2836_v12  ;;  %v2417_v12 = vld [vmem:[%s3828_s8] ss:$0 sm:$0xff] }
 0x101   : > { %2605 = vmatprep.subr.bf16.mxu1 %v2840_v15 }
 0x102   : > { %1071 = vmatpush1.bf16.msra.mxu0 %v2801_v50 }
 0x103   : > { %1605 = vmatprep.subr.bf16.mxu0 %v2808_v57 }
 0x104   : > { %2606 = vmatpush3.bf16.msra.mxu1 %v2840_v15 }
 0x105   : > { %1073 = vmatmul.mubr.bf16.vlgmr.msra.gmra.mrb[0].mxu0 %v3548_v21  ;;  %2607 = vmatprep.subr.bf16.mxu1 %v2844_v18  ;;  %v2848_v21 = vld [vmem:[#allocation6 + $0x18] sm:$0xff]  }
 0x106   : > { %1082 = vmatprep.mubr.bf16.mxu0 %v789_v55  ;;  %1606 = vmatpush1.bf16.msra.mxu0 %v2806_v56 }
 0x107   : > { %1607 = vmatprep.subr.bf16.mxu0 %v2811_v58 }
 0x108   : > { %2608 = vmatpush3.bf16.msra.mxu1 %v2844_v18 }
 0x109   : > { %2609 = vmatprep.subr.bf16.mxu1 %v2848_v21 }
 0x10a   : > { %1608 = vmatpush1.bf16.msra.mxu0 %v2809_v59 }
 0x10b   : > { %1609 = vmatprep.subr.bf16.mxu0 %v2814_v60 }
 0x10c   : > { %2610 = vmatpush3.bf16.msra.mxu1 %v2848_v21 }
 0x10d   : > { %1083 = vmatmul.mubr.bf16.gmra.mrb[4].mxu0 %v2789_v34  ;;  %2611 = vmatprep.subr.bf16.mxu1 %v2852_v24  ;;  %v3738_v34 = vpack.c.bf16 %v3734_v33, %v3731_v32 }
 0x10e   : > { %1610 = vmatpush1.bf16.msra.mxu0 %v2812_v61 }
 0x10f   : > { %1611 = vmatprep.subr.bf16.mxu0 %v2817_v62  ;;  %1637 = vmatprep.mubr.bf16.mxu0 %v3738_v34 }
 0x110   : > { %2612 = vmatpush3.bf16.msra.mxu1 %v2852_v24 }
 0x111   : > { %2613 = vmatprep.subr.bf16.mxu1 %v2856_v27 }
 0x112   : > { %1612 = vmatpush1.bf16.msra.mxu0 %v2815_v63 }
 0x113   : > { %1613 = vmatprep.subr.bf16.mxu0 %v2820_v0 }
 0x114   : > { %2614 = vmatpush3.bf16.msra.mxu1 %v2856_v27 }
 0x115   : > { %2615 = vmatprep.subr.bf16.mxu1 %v2860_v35 }
 0x116   : > { %1614 = vmatpush1.bf16.msra.mxu0 %v2818_v1 }
 0x117   : > { %1615 = vmatprep.subr.bf16.mxu0 %v2823_v2 }
 0x118   : > { %2616 = vmatpush3.bf16.msra.mxu1 %v2860_v35 }
 0x119   : > { %2617 = vmatprep.subr.bf16.mxu1 %v2861_v36 }
 0x11a   : > { %1616 = vmatpush1.bf16.msra.mxu0 %v2821_v3 }
 0x11b   : > { %1617 = vmatprep.subr.bf16.mxu0 %v2826_v4 }
 0x11c   : > { %2618 = vmatpush3.bf16.msra.mxu1 %v2861_v36 }
 0x11d   : > { %2623 = vmatprep.subr.bf16.mxu1 %v3741_v37 }
 0x11e   : > { %1618 = vmatpush1.bf16.msra.mxu0 %v2824_v5 }
 0x11f   : > { %1619 = vmatprep.subr.bf16.mxu0 %v2829_v6 }
 0x122   : > { %1620 = vmatpush1.bf16.msra.mxu0 %v2827_v7 }
 0x123   : > { %1621 = vmatprep.subr.bf16.mxu0 %v2832_v8 }
 0x126   : > { %1622 = vmatpush1.bf16.msra.mxu0 %v2830_v9 }
 0x127   : > { %1623 = vmatprep.subr.bf16.mxu0 %v2835_v10 }
 0x12a   : > { %1624 = vmatpush1.bf16.msra.mxu0 %v2833_v11 }
 0x12b   : > { %1625 = vmatprep.subr.bf16.mxu0 %v2839_v13 }
 0x12e   : > { %1626 = vmatpush1.bf16.msra.mxu0 %v2837_v14 }
 0x12f   : > { %1627 = vmatprep.subr.bf16.mxu0 %v2843_v16 }
 0x132   : > { %1628 = vmatpush1.bf16.msra.mxu0 %v2841_v17 }
 0x133   : > { %1629 = vmatprep.subr.bf16.mxu0 %v2847_v19  ;;  %v2408_v19 = vld [vmem:[%s3827_s7] ss:$0 sm:$0xff] }
 0x136   : > { %1630 = vmatpush1.bf16.msra.mxu0 %v2845_v20 }
 0x137   : > { %1631 = vmatprep.subr.bf16.mxu0 %v2851_v22 }
 0x13a   : > { %1632 = vmatpush1.bf16.msra.mxu0 %v2849_v23 }
 0x13b   : > { %1633 = vmatprep.subr.bf16.mxu0 %v2855_v25 }
 0x13e   : > { %1634 = vmatpush1.bf16.msra.mxu0 %v2853_v26 }
 0x13f   : > { %1635 = vmatprep.subr.bf16.mxu0 %v2859_v28 }
 0x142   : > { %1636 = vmatpush1.bf16.msra.mxu0 %v2857_v29 }
 0x1b2   : > { %v3744_v38 = vpop.f32.mrb[0].mxu1 }
 0x1b3   : > { %v1213_v39 = vpop.f32.mrb[1].mxu1 }
 0x1b4   : > { %v3746_v40 = vpop.f32.mrb[2].mxu1  ;;  %v1214_v24 = vadd.f32 %v2408_v19, %v1213_v39 }
 0x1b5   : > { %v1216_v41 = vpop.f32.mrb[3].mxu1 }
 0x1b6   : > { %v1217_v28 = vadd.f32 %v2408_v19, %v1216_v41 }
 0x1d2   : > { %v2601_v61 = vpop.f32.mrb[4].mxu1 }
 0x1d3   : > { %v1316_v0 = vpop.f32.mrb[5].mxu1 }
 0x1d4   : > { %v2602_v3 = vpop.f32.mrb[6].mxu1  ;;  %v1317_v17 = vadd.f32 %v2417_v12, %v1316_v0 }
 0x1d5   : > { %v1319_v6 = vpop.f32.mrb[7].mxu1  ;;  %v1328_v41 = vadd.f32 %v2602_v3, %v2417_v12 }
 0x1d6   : > { %v1320_v23 = vadd.f32 %v2417_v12, %v1319_v6 }
 0x1d8   : > { %v1074_v48 = vpop.f32.mrb[0].mxu0 }
 0x1d9   : > { %v1075_v50 = vadd.f32 %v1074_v48, %v873_v47  ;;  %v1076_v51 = vpop.f32.mrb[1].mxu0 }
 0x1da   : > { %v1078_v54 = vpop.f32.mrb[2].mxu0  ;;  %v1077_v58 = vadd.f32 %v1076_v51, %v877_v49 }
 0x1db   : > { %v1093_v55 = vmul.f32 0.5, %v1075_v50  ;;  %v1079_v56 = vadd.f32 %v1078_v54, %v873_v47  ;;  %v1080_v57 = vpop.f32.mrb[3].mxu0  ;;  %v1325_v54 = vadd.f32 %v2601_v61, %v2417_v12 }
 0x1dc   : > { %v1081_v60 = vadd.f32 %v1080_v57, %v877_v49  ;;  %v1094_v62 = vmul.f32 0.5, %v1077_v58 }
 0x1dd   : > { %2886 = vtanh.f32 %v1093_v55  ;;  %v1095_v59 = vmul.f32 0.5, %v1079_v56  ;;  %v1222_v55 = vadd.f32 %v3744_v38, %v2408_v19 }
 0x1de   : > { %v1096_v4 = vmul.f32 0.5, %v1081_v60  ;;  %v1225_v60 = vadd.f32 %v3746_v40, %v2408_v19 }
 0x1df   : > { %2888 = vtanh.f32 %v1095_v59 }
 0x1e0   : > { %v1084_v63 = vpop.f32.mrb[4].mxu0  ;;  %2890 = vtanh.f32 %v1094_v62 }
 0x1e1   : > { %v1085_v1 = vadd.f32 %v1084_v63, %v873_v47  ;;  %v1086_v2 = vpop.f32.mrb[5].mxu0 }
 0x1e2   : > { %v1088_v5 = vpop.f32.mrb[6].mxu0  ;;  %v1087_v10 = vadd.f32 %v1086_v2, %v877_v49 }
 0x1e3   : > { %v1097_v7 = vmul.f32 0.5, %v1085_v1  ;;  %v1089_v8 = vadd.f32 %v1088_v5, %v873_v47  ;;  %v1090_v9 = vpop.f32.mrb[7].mxu0 }
 0x1e4   : > { %v1091_v13 = vadd.f32 %v1090_v9, %v877_v49  ;;  %v1098_v16 = vmul.f32 0.5, %v1087_v10 }
 0x1e5   : > { %2892 = vtanh.f32 %v1097_v7  ;;  %v1099_v11 = vmul.f32 0.5, %v1089_v8 }
 0x1e6   : > { %2894 = vtanh.f32 %v1096_v4  ;;  %v1100_v21 = vmul.f32 0.5, %v1091_v13 }
 0x1e7   : > { %v2887_v14 = vpop.eup %2886  ;;  %2896 = vtanh.f32 %v1099_v11 }
 0x1e8   : > { %v1109_v15 = vmul.f32 0.5, %v2887_v14  ;;  %2898 = vtanh.f32 %v1098_v16 }
 0x1e9   : > { %v2889_v18 = vpop.eup %2888  ;;  %2900 = vtanh.f32 %v1100_v21 }
 0x1ea   : > { %v1111_v20 = vmul.f32 0.5, %v2889_v18  ;;  %v1117_v22 = vadd.f32 0.5, %v1109_v15  ;;  %v2891_v27 = vpop.eup %2890 }
 0x1eb   : > { %v1110_v49 = vmul.f32 0.5, %v2891_v27 }
 0x1ec   : > { %v1331_v25 = vmul.f32 %v1317_v17, %v1117_v22  ;;  %v1119_v26 = vadd.f32 0.5, %v1111_v20  ;;  %v3776_v22 = vld [vmem:[%s3728_s20 + $0x10] sm:$0xff] }
 0x1ed   : > { %v1118_v58 = vadd.f32 0.5, %v1110_v49  ;;  %v2872_v49 = vld [vmem:[#allocation12 + $0x48] sm:$0xff]  }
 0x1ee   : > { %v1335_v29 = vadd.f32 %v1331_v25, %v1214_v24  ;;  %v1332_v35 = vmul.f32 %v1320_v23, %v1119_v26  ;;  %v3779_v23 = vld [vmem:[%s3728_s20 + $0x18] sm:$0xff]  ;;  %s773_s20 = scalar_lea.vmem %s3867_s1, %s3557_s18 }
 0x1ef   : > { %v2893_v36 = vpop.eup %2892  ;;  %v1343_v4 = vsub.f32 1.0, %v1118_v58  ;;  %v1351_v6 = vmul.f32 %v1118_v58, %v3575_v30  ;;  %v1366_v25 = vpack.c.bf16 %v3779_v23, %v3776_v22  ;;  %v2881_v58 = vld [vmem:[#allocation12 + $0x28] sm:$0xff]  }
 0x1f0   : > { %v2895_v42 = vpop.eup %2894  ;;  %v1113_v45 = vmul.f32 0.5, %v2893_v36  ;;  %2902 = vtanh.f32 %v1335_v29  ;;  %v1336_v47 = vadd.f32 %v1332_v35, %v1217_v28  ;;  %v2863_v29 = vld [vmem:[#allocation7 + $0x8] sm:$0xff]   ;;  %v2864_v35 = vld [vmem:[#allocation7 + $0x10] sm:$0xff]   ;;  %v2865_v36 = vld [vmem:[#allocation7 + $0x18] sm:$0xff]  }
 0x1f1   : > { %v2897_v48 = vpop.eup %2896  ;;  %v1112_v39 = vmul.f32 0.5, %v2895_v42  ;;  %v2866_v42 = vld [vmem:[#allocation7 + $0x20] sm:$0xff]  }
 0x1f2   : > { %v1115_v50 = vmul.f32 0.5, %v2897_v48  ;;  %v1121_v51 = vadd.f32 0.5, %v1113_v45  ;;  %2904 = vtanh.f32 %v1336_v47  ;;  %v2899_v59 = vpop.eup %2898  ;;  %v2867_v45 = vld [vmem:[#allocation7 + $0x28] sm:$0xff]   ;;  %v2868_v47 = vld [vmem:[#allocation7 + $0x30] sm:$0xff]   ;;  %v2869_v48 = vld [vmem:[#allocation7 + $0x38] sm:$0xff]  }
 0x1f3   : > { %v1120_v0 = vadd.f32 0.5, %v1112_v39  ;;  %v2901_v1 = vpop.eup %2900  ;;  %v1114_v5 = vmul.f32 0.5, %v2899_v59  ;;  %v2876_v39 = vld [vmem:[#allocation12 + $0x58] sm:$0xff]   ;;  %v2882_v59 = vld [vmem:[#allocation12 + $0x70] sm:$0xff]  }
 0x1f4   : > { %v1333_v56 = vmul.f32 %v1325_v54, %v1121_v51  ;;  %v1123_v57 = vadd.f32 0.5, %v1115_v50  ;;  %v1116_v7 = vmul.f32 0.5, %v2901_v1  ;;  %v2873_v50 = vld [vmem:[#allocation12 + $0x8] sm:$0xff]   ;;  %v2874_v51 = vld [vmem:[#allocation12 + $0x50] sm:$0xff]  }
 0x1f5   : > { %v1344_v38 = vsub.f32 1.0, %v1120_v0  ;;  %v1352_v9 = vmul.f32 %v1120_v0, %v3578_v31  ;;  %v1122_v10 = vadd.f32 0.5, %v1114_v5  ;;  %v2875_v54 = vld [vmem:[#allocation12 + $0x10] sm:$0xff]  }
 0x1f6   : > { %v1337_v62 = vadd.f32 %v1333_v56, %v1222_v55  ;;  %v1334_v63 = vmul.f32 %v1328_v41, %v1123_v57  ;;  %v1124_v12 = vadd.f32 0.5, %v1116_v7  ;;  %v2877_v55 = vld [vmem:[#allocation12 + $0x18] sm:$0xff]   ;;  %v2878_v56 = vld [vmem:[#allocation12 + $0x60] sm:$0xff]   ;;  %v2880_v41 = vld [vmem:[#allocation12 + $0x68] sm:$0xff]  }
 0x1f7   : > { %v1345_v14 = vsub.f32 1.0, %v1122_v10  ;;  %v1353_v30 = vmul.f32 %v1122_v10, %v3620_v52  ;;  %v2879_v57 = vld [vmem:[#allocation12 + $0x20] sm:$0xff]   ;;  %v1431_v7 = vld [vmem:[%s3866_s29] sm:$0x3] }
 0x1f8   : > { %2906 = vtanh.f32 %v1337_v62  ;;  %v1338_v2 = vadd.f32 %v1334_v63, %v1225_v60  ;;  %v1346_v16 = vsub.f32 1.0, %v1124_v12  ;;  %v1354_v19 = vmul.f32 %v1124_v12, %v3623_v53  ;;  %v2883_v60 = vld [vmem:[#allocation12 + $0x30] sm:$0xff]   ;;  %v2884_v62 = vld [vmem:[#allocation12 + $0x78] sm:$0xff]  }
 0x1f9   : > { %v2885_v63 = vld [vmem:[#allocation12 + $0x38] sm:$0xff]  }
 0x1fa   : > { %v2903_v61 = vpop.eup %2902  ;;  %2908 = vtanh.f32 %v1338_v2 }
 0x1fb   : > { %v1347_v8 = vmul.f32 %v2903_v61, %v1343_v4 }
 0x1fc   : > { %v2905_v3 = vpop.eup %2904 }
 0x1fd   : > { %v1355_v40 = vadd.f32 %v1351_v6, %v1347_v8  ;;  %v1348_v11 = vmul.f32 %v2905_v3, %v1344_v38 }
 0x1ff   : > { %2910 = vtanh.f32 %v1355_v40  ;;  %v1356_v13 = vadd.f32 %v1352_v9, %v1348_v11  ;;  %v1438_v40 = vrot.slane %v1431_v7, %v872_v44 }
 0x201   : > { %2912 = vtanh.f32 %v1356_v13 }
 0x202   : > { %v2907_v15 = vpop.eup %2906 }
 0x203   : > { %v1349_v17 = vmul.f32 %v2907_v15, %v1345_v14 }
 0x204   : > { %v2909_v18 = vpop.eup %2908 }
 0x205   : > { %v1350_v31 = vmul.f32 %v2909_v18, %v1346_v16  ;;  %v1357_v20 = vadd.f32 %v1353_v30, %v1349_v17  ;;  %v1442_v18 = vrot.slane %v1431_v7, %v876_v46 }
 0x207   : > { %v1358_v21 = vadd.f32 %v1354_v19, %v1350_v31  ;;  %2914 = vtanh.f32 %v1357_v20 }
 0x209   : > { %v2911_v24 = vpop.eup %2910  ;;  %2916 = vtanh.f32 %v1358_v21 }
 0x20a   : > { %2118 = vst [vmem:[%s767_s17] sm:$0xff] %v2911_v24 }
 0x20b   : > { %v2913_v52 = vpop.eup %2912 }
 0x20c   : > { %2119 = vst [vmem:[%s767_s17 + $0x8] sm:$0xff] %v2913_v52  ;;  %v3783_v53 = vpack.c.bf16 %v2913_v52, %v2911_v24 }
 0x20e   : > { %1638 = vmatmul.mubr.bf16.vlgmr.msra.gmra.mrb[8].mxu0 %v3783_v53  ;;  %2619 = vmatprep.mubr.bf16.mxu1 %v3783_v53 }
 0x20f   : > { %1647 = vmatprep.mubr.bf16.mxu0 %v1366_v25 }
 0x211   : > { %v2915_v26 = vpop.eup %2914 }
 0x212   : > { %2120 = vst [vmem:[%s767_s17 + $0x10] sm:$0xff] %v2915_v26 }
 0x213   : > { %v2917_v27 = vpop.eup %2916 }
 0x214   : > { %v3787_v28 = vpack.c.bf16 %v2917_v27, %v2915_v26  ;;  %2121 = vst [vmem:[%s767_s17 + $0x18] sm:$0xff] %v2917_v27 }
 0x216   : > { %1648 = vmatmul.mubr.bf16.gmra.mrb[12].mxu0 %v3787_v28  ;;  %2620 = vmatmul.mubr.bf16.vlgmr.msra.gmra.mrb[8].mxu1 %v3787_v28 }
 0x217   : > { %2624 = vmatpush3.bf16.msra.mxu1 %v3741_v37  ;;  %2639 = vmatprep.mubr.bf16.mxu1 %v3738_v34  ;;  %v2870_v34 = vld [vmem:[#allocation12 + $0x40] sm:$0xff]  }
 0x218   : > { %2625 = vmatprep.subr.bf16.mxu1 %v2863_v29  ;;  %v2871_v37 = vld [vmem:[#allocation12] sm:$0xff]   ;;  %2535 = vmatprep.subr.bf16.mxu0 %v2870_v34 }
 0x219   : > { %2536 = vmatpush3.bf16.msra.mxu0 %v2871_v37 }
 0x21a   : > { %2537 = vmatprep.subr.bf16.mxu0 %v2872_v49 }
 0x21b   : > { %2626 = vmatpush3.bf16.msra.mxu1 %v2863_v29 }
 0x21c   : > { %2627 = vmatprep.subr.bf16.mxu1 %v2864_v35 }
 0x21d   : > { %2538 = vmatpush3.bf16.msra.mxu0 %v2873_v50 }
 0x21e   : > { %2539 = vmatprep.subr.bf16.mxu0 %v2874_v51 }
 0x21f   : > { %2628 = vmatpush3.bf16.msra.mxu1 %v2864_v35 }
 0x220   : > { %2629 = vmatprep.subr.bf16.mxu1 %v2865_v36 }
 0x221   : > { %2540 = vmatpush3.bf16.msra.mxu0 %v2875_v54 }
 0x222   : > { %2541 = vmatprep.subr.bf16.mxu0 %v2876_v39 }
 0x223   : > { %2630 = vmatpush3.bf16.msra.mxu1 %v2865_v36  ;;  %v2467_v36 = vld [vmem:[#allocation10] ss:$0 sm:$0xff] }
 0x224   : > { %2631 = vmatprep.subr.bf16.mxu1 %v2866_v42 }
 0x225   : > { %2542 = vmatpush3.bf16.msra.mxu0 %v2877_v55 }
 0x226   : > { %2543 = vmatprep.subr.bf16.mxu0 %v2878_v56 }
 0x227   : > { %2632 = vmatpush3.bf16.msra.mxu1 %v2866_v42 }
 0x228   : > { %2633 = vmatprep.subr.bf16.mxu1 %v2867_v45 }
 0x229   : > { %2544 = vmatpush3.bf16.msra.mxu0 %v2879_v57 }
 0x22a   : > { %2545 = vmatprep.subr.bf16.mxu0 %v2880_v41 }
 0x22b   : > { %2634 = vmatpush3.bf16.msra.mxu1 %v2867_v45 }
 0x22c   : > { %2635 = vmatprep.subr.bf16.mxu1 %v2868_v47 }
 0x22d   : > { %2546 = vmatpush3.bf16.msra.mxu0 %v2881_v58 }
 0x22e   : > { %2547 = vmatprep.subr.bf16.mxu0 %v2882_v59 }
 0x22f   : > { %2636 = vmatpush3.bf16.msra.mxu1 %v2868_v47  ;;  %v2458_v47 = vld [vmem:[#allocation9] ss:$0 sm:$0xff] }
 0x230   : > { %2637 = vmatprep.subr.bf16.mxu1 %v2869_v48 }
 0x231   : > { %2548 = vmatpush3.bf16.msra.mxu0 %v2883_v60 }
 0x232   : > { %2549 = vmatprep.subr.bf16.mxu0 %v2884_v62 }
 0x233   : > { %2638 = vmatpush3.bf16.msra.mxu1 %v2869_v48 }
 0x234   : > { %2643 = vmatprep.subr.bf16.mxu1 %v2870_v34 }
 0x235   : > { %2550 = vmatpush3.bf16.msra.mxu0 %v2885_v63 }
 0x236   : > { %2640 = vmatmul.mubr.bf16.vlgmr.msra.gmra.mrb[12].mxu1 %v1366_v25 }
 0x237   : > { %2651 = vmatpush3.bf16.msra.mxu1 %v2871_v37 }
 0x238   : > { %2644 = vmatprep.subr.bf16.mxu1 %v2872_v49 }
 0x23b   : > { %2652 = vmatpush3.bf16.msra.mxu1 %v2873_v50 }
 0x23c   : > { %2645 = vmatprep.subr.bf16.mxu1 %v2874_v51 }
 0x23f   : > { %2653 = vmatpush3.bf16.msra.mxu1 %v2875_v54 }
 0x240   : > { %2646 = vmatprep.subr.bf16.mxu1 %v2876_v39 }
 0x243   : > { %2654 = vmatpush3.bf16.msra.mxu1 %v2877_v55 }
 0x244   : > { %2647 = vmatprep.subr.bf16.mxu1 %v2878_v56 }
 0x247   : > { %2655 = vmatpush3.bf16.msra.mxu1 %v2879_v57 }
 0x248   : > { %2648 = vmatprep.subr.bf16.mxu1 %v2880_v41 }
 0x24b   : > { %2656 = vmatpush3.bf16.msra.mxu1 %v2881_v58 }
 0x24c   : > { %2649 = vmatprep.subr.bf16.mxu1 %v2882_v59 }
 0x24f   : > { %2657 = vmatpush3.bf16.msra.mxu1 %v2883_v60 }
 0x250   : > { %2650 = vmatprep.subr.bf16.mxu1 %v2884_v62 }
 0x253   : > { %2658 = vmatpush3.bf16.msra.mxu1 %v2885_v63 }
 0x2e1   : > { %v1639_v0 = vpop.f32.mrb[8].mxu0 }
 0x2e2   : > { %v1641_v1 = vpop.f32.mrb[9].mxu0  ;;  %v1640_v12 = vadd.f32 %v1639_v0, %v1438_v40 }
 0x2e3   : > { %v1643_v2 = vpop.f32.mrb[10].mxu0  ;;  %v1642_v31 = vadd.f32 %v1641_v1, %v1442_v18 }
 0x2e4   : > { %v1645_v4 = vpop.f32.mrb[11].mxu0  ;;  %v1644_v14 = vadd.f32 %v1643_v2, %v1438_v40  ;;  %v1658_v30 = vmul.f32 0.5, %v1640_v12 }
 0x2e5   : > { %v1646_v21 = vadd.f32 %v1645_v4, %v1442_v18  ;;  %v1659_v24 = vmul.f32 0.5, %v1642_v31 }
 0x2e6   : > { %v1660_v17 = vmul.f32 0.5, %v1644_v14 }
 0x2e7   : > { %v1661_v26 = vmul.f32 0.5, %v1646_v21 }
 0x2e9   : > { %v1649_v5 = vpop.f32.mrb[12].mxu0  ;;  %v2621_v61 = vpop.f32.mrb[8].mxu1 }
 0x2ea   : > { %v1651_v6 = vpop.f32.mrb[13].mxu0  ;;  %v1778_v38 = vpop.f32.mrb[9].mxu1  ;;  %v1650_v11 = vadd.f32 %v1649_v5, %v1438_v40  ;;  %v1787_v39 = vadd.f32 %v2621_v61, %v2458_v47 }
 0x2eb   : > { %v1653_v8 = vpop.f32.mrb[14].mxu0  ;;  %v2622_v3 = vpop.f32.mrb[10].mxu1  ;;  %v1652_v19 = vadd.f32 %v1651_v6, %v1442_v18  ;;  %v1779_v58 = vadd.f32 %v2458_v47, %v1778_v38 }
 0x2ec   : > { %v1655_v9 = vpop.f32.mrb[15].mxu0  ;;  %v1781_v10 = vpop.f32.mrb[11].mxu1  ;;  %v1654_v13 = vadd.f32 %v1653_v8, %v1438_v40  ;;  %v1662_v15 = vmul.f32 0.5, %v1650_v11  ;;  %v1790_v0 = vadd.f32 %v2622_v3, %v2458_v47 }
 0x2ed   : > { %v1656_v20 = vadd.f32 %v1655_v9, %v1442_v18  ;;  %v1663_v44 = vmul.f32 0.5, %v1652_v19  ;;  %v1782_v5 = vadd.f32 %v2458_v47, %v1781_v10 }
 0x2ee   : > { %v1664_v16 = vmul.f32 0.5, %v1654_v13  ;;  %2918 = vtanh.f32 %v1662_v15 }
 0x2ef   : > { %2920 = vtanh.f32 %v1658_v30  ;;  %v1665_v52 = vmul.f32 0.5, %v1656_v20 }
 0x2f0   : > { %2922 = vtanh.f32 %v1664_v16 }
 0x2f1   : > { %2924 = vtanh.f32 %v1660_v17 }
 0x2f2   : > { %2926 = vtanh.f32 %v1663_v44 }
 0x2f3   : > { %2928 = vtanh.f32 %v1659_v24 }
 0x2f4   : > { %2930 = vtanh.f32 %v1665_v52 }
 0x2f5   : > { %2932 = vtanh.f32 %v1661_v26 }
 0x2f8   : > { %v2919_v25 = vpop.eup %2918 }
 0x2f9   : > { %v2921_v27 = vpop.eup %2920  ;;  %v1678_v43 = vmul.f32 0.5, %v2919_v25 }
 0x2fa   : > { %v2923_v29 = vpop.eup %2922  ;;  %v1674_v46 = vmul.f32 0.5, %v2921_v27 }
 0x2fb   : > { %v2925_v35 = vpop.eup %2924  ;;  %v1680_v42 = vmul.f32 0.5, %v2923_v29  ;;  %v1686_v34 = vadd.f32 0.5, %v1678_v43 }
 0x2fc   : > { %v1676_v45 = vmul.f32 0.5, %v2925_v35  ;;  %v1682_v50 = vadd.f32 0.5, %v1674_v46  ;;  %v2927_v63 = vpop.eup %2926 }
 0x2fd   : > { %v1688_v56 = vadd.f32 0.5, %v1680_v42  ;;  %v2929_v4 = vpop.eup %2928  ;;  %v1679_v40 = vmul.f32 0.5, %v2927_v63 }
 0x2fe   : > { %v1684_v60 = vadd.f32 0.5, %v1676_v45  ;;  %v2931_v8 = vpop.eup %2930  ;;  %v1675_v12 = vmul.f32 0.5, %v2929_v4 }
 0x2ff   : > { %v2933_v61 = vpop.eup %2932  ;;  %v1681_v38 = vmul.f32 0.5, %v2931_v8  ;;  %v1687_v14 = vadd.f32 0.5, %v1679_v40 }
 0x300   : > { %v1677_v13 = vmul.f32 0.5, %v2933_v61  ;;  %v1683_v3 = vadd.f32 0.5, %v1675_v12 }
 0x301   : > { %v1689_v15 = vadd.f32 0.5, %v1681_v38  ;;  %v1910_v16 = vsub.f32 1.0, %v1687_v14  ;;  %v1918_v19 = vmul.f32 %v1687_v14, %v3776_v22 }
 0x302   : > { %v1685_v30 = vadd.f32 0.5, %v1677_v13  ;;  %v1908_v17 = vsub.f32 1.0, %v1683_v3  ;;  %v1916_v44 = vmul.f32 %v1683_v3, %v3731_v32 }
 0x303   : > { %v1911_v31 = vsub.f32 1.0, %v1689_v15  ;;  %v1919_v26 = vmul.f32 %v1689_v15, %v3779_v23 }
 0x304   : > { %v1909_v24 = vsub.f32 1.0, %v1685_v30  ;;  %v1917_v35 = vmul.f32 %v1685_v30, %v3734_v33 }
 0x309   : > { %v2641_v48 = vpop.f32.mrb[12].mxu1 }
 0x30a   : > { %v1890_v37 = vadd.f32 %v2641_v48, %v2467_v36  ;;  %v1881_v49 = vpop.f32.mrb[13].mxu1 }
 0x30b   : > { %v1882_v51 = vadd.f32 %v2467_v36, %v1881_v49  ;;  %v2642_v54 = vpop.f32.mrb[14].mxu1 }
 0x30c   : > { %v1898_v55 = vmul.f32 %v1890_v37, %v1686_v34  ;;  %v1893_v57 = vadd.f32 %v2642_v54, %v2467_v36  ;;  %v1884_v41 = vpop.f32.mrb[15].mxu1  ;;  %v2476_v37 = vld [vmem:[%s3868_s2] ss:$0 sm:$0xff] }
 0x30d   : > { %v1896_v59 = vmul.f32 %v1882_v51, %v1682_v50  ;;  %v1885_v62 = vadd.f32 %v2467_v36, %v1884_v41 }
 0x30e   : > { %v1902_v1 = vadd.f32 %v1898_v55, %v1787_v39  ;;  %v1899_v2 = vmul.f32 %v1893_v57, %v1688_v56 }
 0x30f   : > { %v1900_v6 = vadd.f32 %v1896_v59, %v1779_v58  ;;  %v1897_v7 = vmul.f32 %v1885_v62, %v1684_v60 }
 0x310   : > { %2934 = vtanh.f32 %v1902_v1  ;;  %v1903_v9 = vadd.f32 %v1899_v2, %v1790_v0 }
 0x311   : > { %2936 = vtanh.f32 %v1900_v6  ;;  %v1901_v11 = vadd.f32 %v1897_v7, %v1782_v5 }
 0x312   : > { %2938 = vtanh.f32 %v1903_v9 }
 0x313   : > { %2940 = vtanh.f32 %v1901_v11 }
 0x31a   : > { %v2935_v10 = vpop.eup %2934 }
 0x31b   : > { %v2937_v18 = vpop.eup %2936  ;;  %v1914_v20 = vmul.f32 %v2935_v10, %v1910_v16 }
 0x31c   : > { %v2939_v21 = vpop.eup %2938  ;;  %v1912_v52 = vmul.f32 %v2937_v18, %v1908_v17 }
 0x31d   : > { %v2941_v25 = vpop.eup %2940  ;;  %v1915_v27 = vmul.f32 %v2939_v21, %v1911_v31  ;;  %v1922_v29 = vadd.f32 %v1918_v19, %v1914_v20 }
 0x31e   : > { %v1913_v43 = vmul.f32 %v2941_v25, %v1909_v24  ;;  %v1920_v46 = vadd.f32 %v1916_v44, %v1912_v52 }
 0x31f   : > { %v1923_v36 = vadd.f32 %v1919_v26, %v1915_v27  ;;  %2942 = vtanh.f32 %v1922_v29 }
 0x320   : > { %v1921_v22 = vadd.f32 %v1917_v35, %v1913_v43  ;;  %2944 = vtanh.f32 %v1920_v46 }
 0x321   : > { %2946 = vtanh.f32 %v1923_v36 }
 0x322   : > { %2948 = vtanh.f32 %v1921_v22 }
 0x329   : > { %v2943_v32 = vpop.eup %2942 }
 0x32a   : > { %v2945_v42 = vpop.eup %2944  ;;  %2124 = vst [vmem:[%s773_s20 + $0x10] sm:$0xff] %v2943_v32 }
 0x32b   : > { %v2947_v23 = vpop.eup %2946  ;;  %2122 = vst [vmem:[%s773_s20] sm:$0xff] %v2945_v42 }
 0x32c   : > { %v2949_v45 = vpop.eup %2948  ;;  %v1929_v33 = vpack.c.bf16 %v2947_v23, %v2943_v32  ;;  %2125 = vst [vmem:[%s773_s20 + $0x18] sm:$0xff] %v2947_v23 }
 0x32d   : > { %v1928_v47 = vpack.c.bf16 %v2949_v45, %v2945_v42  ;;  %2123 = vst [vmem:[%s773_s20 + $0x8] sm:$0xff] %v2949_v45 }
 0x32e   : > { %2105 = vmatprep.mubr.bf16.mxu1 %v1929_v33 }
 0x32f   : > { %2097 = vmatprep.mubr.bf16.mxu0 %v1928_v47  ;;  %2106 = vmatmul.mubr.bf16.vlgmr.msra.gmra.mrb[16].mxu1 %v3787_v28 }
 0x330   : > { %2098 = vmatmul.mubr.bf16.vlgmr.msra.gmra.mrb[16].mxu0 %v3783_v53 }
 0x402   : > { %v2557_v48 = vpop.f32.mrb[16].mxu1 }
 0x403   : > { %v2551_v34 = vpop.f32.mrb[16].mxu0  ;;  %v2558_v49 = vpop.f32.mrb[17].mxu1 }
 0x404   : > { %v2559_v50 = vadd.f32 %v2558_v49, %v2557_v48  ;;  %v2552_v51 = vpop.f32.mrb[17].mxu0  ;;  %v2560_v54 = vpop.f32.mrb[18].mxu1 }
 0x405   : > { %v2553_v39 = vadd.f32 %v2552_v51, %v2551_v34  ;;  %v2554_v55 = vpop.f32.mrb[18].mxu0  ;;  %v2561_v56 = vpop.f32.mrb[19].mxu1 }
 0x406   : > { %v2108_v28 = vadd.f32 %v2559_v50, %v2476_v37  ;;  %v2562_v57 = vadd.f32 %v2561_v56, %v2560_v54  ;;  %v2555_v53 = vpop.f32.mrb[19].mxu0 }
 0x407   : > { %v2100_v41 = vadd.f32 %v2553_v39, %v2476_v37  ;;  %v2556_v58 = vadd.f32 %v2555_v53, %v2554_v55 }
 0x408   : > { %2116 = vst [vmem:[%s761_s23 + $0x10] sm:$0xff] %v2108_v28  ;;  %v2111_v59 = vadd.f32 %v2562_v57, %v2476_v37 }
 0x409   : > { %2114 = vst [vmem:[%s761_s23] sm:$0xff] %v2100_v41  ;;  %v2103_v60 = vadd.f32 %v2556_v58, %v2476_v37 }
 0x40a   : > { %2117 = vst [vmem:[%s761_s23 + $0x18] sm:$0xff] %v2111_v59 }
 0x40b   : > { %2115 = vst [vmem:[%s761_s23 + $0x8] sm:$0xff] %v2103_v60 }
 0x40c PF: > { %s34_s0 = sadd.s32 1, %s3168_s0  }
 0x40d   : > { %p31_p3 = scmp.ge.s32.totalorder %s34_s0, 6  }
 0x40f   :  { %33 = sbr.rel (!%p31_p3) target bundleno = 14 (0xe), region = 177 }
 0x416   :  { %2182 = vsyncpa [#allocation3], 1 }
 0x417   :  { %2184 = vsyncpa [#allocation3 + $0x1], 1 }
 0x418   :  { %2185 = vsyncpa [#allocation5], 1 }
 0x419   :  { %2186 = vsyncpa [#allocation8], 1 }
 0x41a   :  { %2187 = vsyncpa [#allocation11], 1 }

</bundles_post_ra>
